<compile_context>
chip_gen: v7x
topology: tpu7x:2x2x1
jax: 0.10.0
libtpu: 0.0.40
codegen_flags: <defaults>
</compile_context>

<pallas_src>
import functools

import jax
import jax.numpy as jnp
from jax.experimental import pallas as pl
from jax.experimental.pallas import tpu as pltpu

f32 = jnp.float32


def _round_up(a, m):
    return ((a + m - 1) // m) * m


# --------------------------------------------------------------------------
# Kernel: one lane-dense batch tile -> one lane-dense output row segment.
# --------------------------------------------------------------------------
def _gtl_kernel(x_ref, wv_ref, b_ref, out_ref, *, upcast):
    # x_ref : (TB, D) VMEM  -- streamed batch tile of the flattened input
    # wv_ref: (1, D)  VMEM  -- fused constant weight row (constant block)
    # b_ref : (1,)    SMEM  -- bias scalar
    # out_ref:(1, TB) VMEM  -- lane-dense output segment
    x = x_ref[...]
    w = wv_ref[...]
    if upcast:
        prod = x.astype(f32) * w          # safe on every generation (wv is f32)
    else:
        prod = (x * w).astype(f32)        # bf16 VPU multiply (v6e/v7x), f32 acc
    out_ref[...] = jnp.sum(prod, axis=-1)[None, :] - b_ref[0]


# --------------------------------------------------------------------------
# Batch-tile selection: big tiles, lane-dense, >=2 grid steps for large B.
# --------------------------------------------------------------------------
def _choose_batch_tile(B, row_bytes, tile_bytes):
    cap = max(8, tile_bytes // row_bytes)          # VMEM-budget cap (rows)
    if cap >= 128:
        cap -= cap % 128
    else:
        cap = max(8, cap - cap % 8)
    if B <= 128:
        return max(8, min(_round_up(B, 8), cap))
    # B > 128: aim for at least 2 grid steps (v7x 2-TC sharding + pipelining),
    # 128-aligned tiles so output stores are unmasked lane-dense vst.
    tb = min(_round_up(pl.cdiv(B, 2), 128), cap)
    return max(tb, 8)


# --------------------------------------------------------------------------
# Wrapper
# --------------------------------------------------------------------------
def gtl_nn_forward(x, t, A1, A2, b, A_n, A_disj, k, *,
                   tile_bytes=8 * 1024 * 1024,
                   vmem_limit_bytes=40 * 1024 * 1024,
                   x_buffer_count=2,
                   upcast_in_kernel=True,
                   pallas_min_bytes=256 * 1024):
    """Pallas implementation of GTL_NN.forward. Returns shape (B,) float32."""
    B, T15, np1, M = x.shape
    assert T15 == 15, "time-window dim must be 15 (= 7 + 8)"
    D = T15 * np1 * M

    # ---- batch-independent fused weight row (tiny plain-JAX glue) ----
    # k must be concrete Python scalars (as in the torch module __init__).
    k1 = 1.0 if k[0] >= 0 else -1.0
    k2 = 1.0 if k[1] >= 0 else -1.0
    k3 = 1.0 if k[2] >= 0 else -1.0
    k4 = 1.0 if k[3] >= 0 else -1.0

    A1f = jnp.concatenate([A1.astype(f32), jnp.zeros((8, 1), f32)], axis=0)   # (15,1)
    A2f = jnp.concatenate([jnp.zeros((7, 1), f32), A2.astype(f32)], axis=0)   # (15,1)
    A_sm1 = jnp.abs(A1f) / jnp.sum(jnp.abs(A1f))
    A_sm2 = jnp.abs(A2f) / jnp.sum(jnp.abs(A2f))
    A_n_sm = jnp.abs(A_n).astype(f32) / jnp.sum(jnp.abs(A_n))                 # (1,n+1)
    A_disj_sm = (jnp.abs(A_disj) / jnp.sum(jnp.abs(A_disj))).reshape(2).astype(f32)

    # softmax over the size-1 "formula" dim is identity -> constants k3/k4.
    g1 = k1 * jax.nn.softmax(k3 * A_sm1, axis=0) * A_n_sm                     # (15,n+1)
    g2 = k2 * jax.nn.softmax(k4 * A_sm2, axis=0) * A_n_sm                     # (15,n+1)
    p = jax.nn.softmax(jnp.stack([g1, -g2], axis=0), axis=0)                  # (2,15,n+1)
    w = p[0] * A_disj_sm[0] + p[1] * A_disj_sm[1]                             # (15,n+1)
    W = jnp.sum(w)

    t_vec = t.reshape(M).astype(f32)
    wv = ((w[:, :, None] * t_vec[None, None, :]).reshape(1, D) / W).astype(f32)  # (1,D)
    b_s = b.reshape(1).astype(f32)

    # x is consumed in whatever dtype the producer hands over (no wrapper cast:
    # a f32->bf16 cast here would add a full HBM read/write pass).
    x_flat = x.reshape(B, D)                                  # free reshape

    # ---- small-problem fast path: pallas launch overhead would dominate ----
    if B * D * x.dtype.itemsize < pallas_min_bytes:
        return jnp.dot(x_flat.astype(f32), wv.reshape(D)) - b_s[0]

    # ---- lane alignment of the reduced axis (no-op for reference configs) ----
    if D % 128 != 0:
        Dp = _round_up(D, 128)
        x_flat = jnp.pad(x_flat, ((0, 0), (0, Dp - D)))
        wv = jnp.pad(wv, ((0, 0), (0, Dp - D)))
        D = Dp

    # ---- batch tiling + padding (no divisibility requirement on B) ----
    itemsize = x_flat.dtype.itemsize
    TB = _choose_batch_tile(B, D * itemsize, tile_bytes)
    nb = pl.cdiv(B, TB)
    B_pad = nb * TB
    if B_pad != B:
        x_flat = jnp.pad(x_flat, ((0, B_pad - B), (0, 0)))

    upcast = upcast_in_kernel or x_flat.dtype == f32
    wv_in = wv if upcast else wv.astype(x_flat.dtype)

    x_spec_kwargs = {}
    if x_buffer_count != 2:                     # v7x sweep knob: pl.Buffered(3)
        x_spec_kwargs["pipeline_mode"] = pl.Buffered(x_buffer_count)

    kernel = functools.partial(_gtl_kernel, upcast=upcast)

    out = pl.pallas_call(
        kernel,
        out_shape=jax.ShapeDtypeStruct((1, B_pad), f32),
        grid=(nb,),
        in_specs=[
            pl.BlockSpec((TB, D), lambda i: (i, 0), **x_spec_kwargs),   # x tile
            pl.BlockSpec((1, D), lambda i: (0, 0)),                     # wv (const)
            pl.BlockSpec(memory_space=pltpu.MemorySpace.SMEM),          # bias
        ],
        out_specs=pl.BlockSpec((1, TB), lambda i: (0, i)),              # lane-dense
        compiler_params=pltpu.CompilerParams(
            dimension_semantics=("parallel",),       # v7x: shard batch over 2 TCs
            vmem_limit_bytes=vmem_limit_bytes),
    )(x_flat, wv_in, b_s)

    return out[0, :B]                                                    # (B,)


# ---- pure-JAX reference (mirrors the torch forward op-by-op) ----
def gtl_nn_reference(x, t, A1, A2, b, A_n, A_disj, k):
    B = x.shape[0]
    np1 = x.shape[2]
    k1 = 1 if k[0] >= 0 else -1
    k2 = 1 if k[1] >= 0 else -1
    k3 = 1 if k[2] >= 0 else -1
    k4 = 1 if k[3] >= 0 else -1
    A1f = jnp.concatenate([A1, jnp.zeros((8, 1), f32)], axis=0)
    A2f = jnp.concatenate([jnp.zeros((7, 1), f32), A2], axis=0)
    r_a = (jnp.matmul(x, t) - b).reshape(B, 1, 15, np1)
    A_sm1 = jnp.abs(A1f) / jnp.sum(jnp.abs(A1f))
    A_sm2 = jnp.abs(A2f) / jnp.sum(jnp.abs(A2f))
    A_n_sm = jnp.abs(A_n) / jnp.sum(jnp.abs(A_n))
    A_disj_sm = jnp.abs(A_disj) / jnp.sum(jnp.abs(A_disj))
    tmp1 = k3 * jax.nn.softmax(r_a, axis=1)
    tmp2 = k4 * jax.nn.softmax(r_a, axis=1)
    g1 = k1 * jax.nn.softmax(tmp1 * A_sm1, axis=2) * A_n_sm
    g2 = k2 * jax.nn.softmax(tmp2 * A_sm2, axis=2) * A_n_sm
    cat = jnp.concatenate([g1, -g2], axis=1)                 # (B,2,15,n+1)
    xs = jax.nn.softmax(cat, axis=1) * A_disj_sm
    wsx = xs * r_a
    weisum = jnp.sum(xs, axis=(1, 2, 3))
    return jnp.sum(wsx, axis=(1, 2, 3)) / weisum


if __name__ == "__main__":
    # Module hyper-parameters: T=8 (=> 7+8=15 time taps), M features, n neighbors.
    # B=200 exercises batch padding (pad to 2 tiles of 128) and 2 grid steps.
    B, M, n, T = 200, 32, 3, 8
    k = [1, -1, 1, 1]

    key = jax.random.PRNGKey(0)
    kx, kb, kan, kx2 = jax.random.split(key, 4)

    x = jax.random.normal(kx, (B, 15, n + 1, M), dtype=jnp.float32)
    t = 1e-5 * jnp.ones((M, 1), f32)
    A1 = 0.5 * jnp.ones((7, 1), f32)
    A2 = 0.5 * jnp.ones((8, 1), f32)
    b = 1e-5 * jax.random.normal(kb, (1, 1), dtype=f32)
    A_n = jax.random.uniform(kan, (1, n + 1), dtype=f32)
    A_disj = 0.5 * jnp.ones((2, 1, 1), f32)

    # Pallas path (large-ish batch).
    out = jax.block_until_ready(gtl_nn_forward(x, t, A1, A2, b, A_n, A_disj, k))
    ref = gtl_nn_reference(x, t, A1, A2, b, A_n, A_disj, k)
    assert out.shape == (B,), out.shape
    if not bool(jnp.allclose(out, ref, rtol=1e-4, atol=1e-6)):
        raise AssertionError(f"pallas path mismatch: {out[:4]} vs {ref[:4]}")

    # Tiny batch exercises the small-problem fast path (no pallas launch).
    x_small = jax.random.normal(kx2, (16, 15, n + 1, M), dtype=jnp.float32)
    out_s = jax.block_until_ready(
        gtl_nn_forward(x_small, t, A1, A2, b, A_n, A_disj, k))
    ref_s = gtl_nn_reference(x_small, t, A1, A2, b, A_n, A_disj, k)
    if not bool(jnp.allclose(out_s, ref_s, rtol=1e-4, atol=1e-6)):
        raise AssertionError(f"fast path mismatch: {out_s[:4]} vs {ref_s[:4]}")

    print("KERNEL_OK")
</pallas_src>

<mosaic_0001>
module attributes {stable_mosaic.version = 11 : i64} {
  func.func @_gtl_kernel(%arg0: i32, %arg1: memref<128x1920xf32, #tpu.memory_space<vmem>>, %arg2: memref<1x1920xf32, #tpu.memory_space<vmem>>, %arg3: memref<1xf32, #tpu.memory_space<smem>>, %arg4: memref<1x128xf32, #tpu.memory_space<vmem>>) attributes {dimension_semantics = [#tpu.dimension_semantics<parallel>], iteration_bounds = array<i64: 2>, scalar_prefetch = 0 : i64, scratch_operands = 0 : i64, tpu.core_type = #tpu.core_type<tc>, window_params = [{transform_indices = @transform_0, window_bounds = array<i64: 128, 1920>}, {pipeline_mode = #tpu.pipeline_mode<synchronous>, transform_indices = @transform_1, window_bounds = array<i64: 1, 1920>}, {transform_indices = @transform_2, window_bounds = array<i64: 1>}, {transform_indices = @transform_3, window_bounds = array<i64: 1, 128>}]} {
    %c0 = arith.constant 0 : index
    %c0_0 = arith.constant 0 : index
    %0 = vector.load %arg1[%c0, %c0_0] : memref<128x1920xf32, #tpu.memory_space<vmem>>, vector<128x1920xf32>
    %c0_1 = arith.constant 0 : index
    %c0_2 = arith.constant 0 : index
    %1 = vector.load %arg2[%c0_1, %c0_2] : memref<1x1920xf32, #tpu.memory_space<vmem>>, vector<1x1920xf32>
    %2 = vector.broadcast %1 : vector<1x1920xf32> to vector<128x1920xf32>
    %3 = arith.mulf %0, %2 : vector<128x1920xf32>
    %cst = arith.constant dense<0.000000e+00> : vector<128xf32>
    %4 = vector.multi_reduction <add>, %3, %cst [1] : vector<128x1920xf32> to vector<128xf32>
    %5 = vector.shape_cast %4 : vector<128xf32> to vector<1x128xf32>
    %c0_3 = arith.constant 0 : index
    %6 = memref.load %arg3[%c0_3] : memref<1xf32, #tpu.memory_space<smem>>
    %7 = vector.broadcast %6 : f32 to vector<1x128xf32>
    %8 = arith.subf %5, %7 : vector<1x128xf32>
    %c0_4 = arith.constant 0 : index
    %c0_5 = arith.constant 0 : index
    %9 = vector.load %arg4[%c0_4, %c0_5] : memref<1x128xf32, #tpu.memory_space<vmem>>, vector<1x128xf32>
    tpu.vector_store %arg4[%c0_4, %c0_5], %8 {strides = array<i32>} : memref<1x128xf32, #tpu.memory_space<vmem>>, vector<1x128xf32>,
    return
  }
  func.func @transform_0(%arg0: i32) -> (i32, i32) {
    %c0_i32 = arith.constant 0 : i32
    %c0_i32_0 = arith.constant 0 : i32
    return %arg0, %c0_i32 : i32, i32
  }
  func.func @transform_1(%arg0: i32) -> (i32, i32) {
    %c0_i32 = arith.constant 0 : i32
    %c0_i32_0 = arith.constant 0 : i32
    %c0_i32_1 = arith.constant 0 : i32
    return %c0_i32, %c0_i32_0 : i32, i32
  }
  func.func @transform_2(%arg0: i32) -> i32 {
    %c0_i32 = arith.constant 0 : i32
    %c0_i32_0 = arith.constant 0 : i32
    return %c0_i32 : i32
  }
  func.func @transform_3(%arg0: i32) -> (i32, i32) {
    %c0_i32 = arith.constant 0 : i32
    %c0_i32_0 = arith.constant 0 : i32
    return %c0_i32, %arg0 : i32, i32
  }
}

</mosaic_0001>

<bundles_post_ra>
// kernel: tpu_custom_call.1
= control target key start
LH: loop header
LB: loop body
LE: loop exit
PB: predicated region body
PF: predicated region fallthrough
CT: control target
= control target key end

     0   :  { %s2289_s0 = inlined_call_operand.hbm [shape: f32[256,1920], index: 0, kind: input, shape index: {}]   ;;  %s2290_s1 = inlined_call_operand.hbm [shape: f32[1,1920], index: 1, kind: input, shape index: {}]   ;;  %s2291_s2 = inlined_call_operand.<no memory space> [shape: f32[1], index: 2, kind: input, shape index: {}]   ;;  %s2292_s3 = inlined_call_operand.hbm [shape: f32[1,256], index: 3, kind: output, shape index: {}]  }
   0x1   :  { %8 = sst [smem:[#allocation2]] %s2291_s2 }
   0x2   :  { %9 = vsyncpa [#allocation4], 0 }
   0x3   :  { %11 = vsyncpa [#allocation4 + $0x1], 0 }
   0x4   :  { %12 = vsyncpa [#allocation7], 0 }
   0x5   :  { %13 = vsyncpa [#allocation5], 0 }
   0x6   :  { %15 = vsyncpa [#allocation5 + $0x1], 0  ;;  %s1487_s14 = smov 0   ;;  %s1489_s15 = smov 0  }
   0x7   :  { %s1491_s16 = smov 0   ;;  %s1493_s17 = smov 0  }
   0x8 LB: > { %s1508_s2 = sadd.s32 4294967295, %s1457_s17   ;;  %s1255_s18 = sadd.s32 4294967294, %s1457_s17   ;;  %s1457_s17 = sphi %s1493_s17, %s2317_s17   ;;  %s1453_s16 = sphi %s1491_s16, %s2316_s16   ;;  %s1449_s15 = sphi %s1489_s15, %s2315_s15   ;;  %s1445_s14 = sphi %s1487_s14, %s2314_s14  }
   0x9   : > { %s1512_s19 = sadd.s32 1, %s1457_s17   ;;  %s28_s20 = sadd.s32 1, %s1453_s16 }
   0xa   : > { %s25_s21 = ssub.s32 %s1457_s17, %s1512_s19  ;;  %p35_p0 = scmp.ne.s32.totalorder %s1453_s16, %s1449_s15 }
   0xb   : > { %p26_p1 = scmp.eq.s32.totalorder %s25_s21, 0  ;;  %p36_p2 = scmp.eq.s32.totalorder %s1457_s17, 0 }
   0xc   : > { %p41_p3 = scmp.ne.s32.totalorder %s1449_s15, %s1445_s14  ;;  %p2293_p4 = scmp.eq.s32.totalorder %s1508_s2, 0 }
   0xd   : > { %s1524_s22 = scalar_select %p26_p1, %s1453_s16, %s28_s20  }
   0xe   : > { %p1526_p5 = por %p36_p2, %p35_p0  ;;  %p1532_p6 = por %p2293_p4, %p41_p3 }
   0xf   : > { %p107_p7 = scmp.eq.s32.totalorder %s1508_s2, 1  ;;  %p113_p8 = scmp.eq.s32.totalorder %s1255_s18, 1 }
  0x10   : > { %s2299_s24 = scalar_select %p1532_p6, 1, 0 }
  0x11   : > { %p1256_p9 = scmp.ge.s32.totalorder %s1457_s17, 1  ;;  %p120_p10 = scmp.lt.s32.totalorder %s1457_s17, 3 }
  0x12   : > { %p1539_p11 = por %p107_p7, %p35_p0  ;;  %p1543_p12 = por %p113_p8, %p41_p3 }
  0x13   : > { %p1547_p13 = pnand %p1256_p9, %p120_p10  ;;  %s1459_s28 = smov [#allocation6]  }
  0x14   : > { %s2300_s25 = scalar_select %p1539_p11, 1, 0 }
  0x15   : > { %s2301_s26 = scalar_select %p1543_p12, 1, 0 }
  0x16   : > { %s2302_s27 = scalar_select %p1547_p13, 1, 0 }
  0x17   : > { %p1278_p2 = pneg %p1547_p13  ;;  %s133_s29 = sshll.u32 %s1459_s28, 4  ;;  %s134_s29 = int_to_ptr.vmem [resolvable:$true] %s133_s29 }
  0x18   : > { %p1291_p4 = scmp.lt.s32.totalorder %s1457_s17, 2  ;;  %p2303_p0 = scmp.eq.s32.totalorder %s1508_s2, 0 }
  0x19   : > { %s147_s4 = sand.u32 1, %s1453_s16   ;;  %s1329_s9 = scalar_lea.hbm %s2290_s1, 240 }
  0x1a   : > { %p1557_p7 = pnand %p1278_p2, %p2303_p0  ;;  %p1564_p3 = pnand %p1291_p4, %p1526_p5 }
  0x1b   : > { %s1267_s6 = smul.u32 1920, %s147_s4  ;;  %p1330_p8 = scmp.ne.s32.totalorder %s2290_s1, %s1329_s9 }
  0x1c   : > { %s2305_s5 = scalar_select %p1564_p3, 1, 0 }
  0x1d   : > { %p1331_p9 = pneg %p1557_p7  ;;  %p1336_p4 = scmp.lt.u32.totalorder %s1329_s9, %s2290_s1 }
  0x1f   : > { %p1332_p10 = pnand %p1331_p9, %p1330_p8 }
  0x21   : > { %p1333_p2 = pneg %p1332_p10 }
  0x23   : > { %p1338_p5 = pnand %p1336_p4, %p1333_p2 }
  0x25   : > { %1341 = shalt.err (!%p1338_p5)
}
  0x26   : > { %s1342_s18 = scalar_lea.vmem %s134_s29, 240  ;;  %s1349_s20 = scalar_lea.vmem %s134_s29, 256 }
  0x27   : > { %p1343_p0 = scmp.ne.s32.totalorder %s134_s29, %s1342_s18  ;;  %p1350_p11 = scmp.lt.s32.totalorder %s134_s29, %s134_s29 }
  0x28   : > { %p1351_p6 = scmp.lt.s32.totalorder %s1349_s20, %s1342_s18 }
  0x29   : > { %p1345_p1 = pnand %p1343_p0, %p1331_p9 }
  0x2a   : > { %p1352_p13 = por %p1351_p6, %p1350_p11 }
  0x2b   : > { %p1346_p12 = pneg %p1345_p1 }
  0x2d   : > { %p1353_p3 = pnand %p1352_p13, %p1346_p12 }
  0x2f   : > { %1356 = shalt.err (!%p1353_p3)
}
  0x30   : > { %1281 = dma.hbm_to_vmem [thread:$0]  (!%p1557_p7), %s2290_s1, 240, %s134_s29, [#allocation7]  }
  0x31   : > { %s1268_s28 = smul.u32 30720, %s1457_s17  ;;  %s151_s7 = scalar_lea.vmem [#allocation3], %s1267_s6 }
  0x32   : > { %s159_s8 = sshll.u32 %s151_s7, 4  ;;  %s1592_s30 = scalar_lea.sflag [#allocation4], %s147_s4  ;;  %s1585_s8 = int_to_ptr.vmem [resolvable:$true] %s159_s8 }
  0x33   : > { %s1590_s11 = scalar_lea.hbm %s2289_s0, %s1268_s28  ;;  %p2306_p11 = scmp.ne.s32.totalorder %s2305_s5, 0 }
  0x34   : > { %s1357_s12 = scalar_lea.hbm %s1590_s11, 30720  ;;  %s1362_s13 = scalar_lea.hbm %s2289_s0, 61440 }
  0x35   : > { %p1358_p6 = scmp.ne.s32.totalorder %s1590_s11, %s1357_s12  ;;  %p1359_p12 = pneg %p2306_p11 }
  0x36   : > { %p1363_p7 = scmp.lt.u32.totalorder %s1590_s11, %s2289_s0  ;;  %p1364_p3 = scmp.lt.u32.totalorder %s1362_s13, %s1357_s12 }
  0x37   : > { %p1360_p13 = pnand %p1359_p12, %p1358_p6  ;;  %p1366_p9 = scmp.lt.u32.totalorder %s1357_s12, %s1590_s11 }
  0x38   : > { %p1365_p8 = por %p1364_p3, %p1363_p7 }
  0x39   : > { %p1361_p1 = pneg %p1360_p13 }
  0x3a   : > { %p1367_p10 = por %p1366_p9, %p1365_p8 }
  0x3c   : > { %p1368_p2 = pnand %p1367_p10, %p1361_p1 }
  0x3e   : > { %1371 = shalt.err (!%p1368_p2)
}
  0x3f   : > { %s1372_s4 = scalar_lea.vmem %s1585_s8, 30720  ;;  %s1460_s21 = smov [#allocation3]  }
  0x40   : > { %p1373_p4 = scmp.ne.s32.totalorder %s1585_s8, %s1372_s4  ;;  %s1377_s23 = sshll.u32 %s1460_s21, 4  ;;  %s1378_s23 = int_to_ptr.vmem [resolvable:$false] %s1377_s23 }
  0x41   : > { %s1379_s28 = scalar_lea.vmem %s1378_s23, 61440  ;;  %p1380_p6 = scmp.lt.s32.totalorder %s1585_s8, %s1378_s23 }
  0x42   : > { %p1375_p5 = pnand %p1373_p4, %p1359_p12  ;;  %p1381_p13 = scmp.lt.s32.totalorder %s1379_s28, %s1372_s4 }
  0x44   : > { %p1376_p0 = pneg %p1375_p5  ;;  %p1382_p7 = por %p1381_p13, %p1380_p6 }
  0x46   : > { %p1383_p3 = pnand %p1382_p7, %p1376_p0 }
  0x48   : > { %1386 = shalt.err (!%p1383_p3)
}
  0x49   : > { %s1461_s7 = smov 1920   ;;  %s1462_s9 = smov 120  }
  0x4a   : > { %1285 = dma.hbm_to_vmem [thread:$0]  (!%p2306_p11), %s1590_s11, 30720, %s1585_s8, %s1592_s30, %s1461_s7, %s1461_s7, %s1462_s9  }
  0x4b   : > { %p2307_p12 = scmp.ne.s32.totalorder %s2302_s27, 0 }
  0x4c   : > { %s1623_s10 = sand.u32 (!%p2307_p12), 1, %s1449_s15   ;;  %p2308_p1 = scmp.ne.s32.totalorder (!%p2307_p12), %s2299_s24, 0 }
  0x4d   : > { %171 = sbr.rel (%p2307_p12) target bundleno = 388 (0x184), region = 32  ;;  %s174_s29 = scalar_lea.sflag (!%p2307_p12), [#allocation4], %s1623_s10 }
  0x4e   : > { %s1269_s12 = smul.u32 (!%p2307_p12), 1920, %s1623_s10 }
  0x50   : > { %s1627_s6 = scalar_lea.vmem (!%p2307_p12), [#allocation3], %s1269_s12 }
  0x54   : > { %1432 = dma.done.wait (%p2308_p1), %s174_s29, 30720  }
  0x55   : > { %1434 = vsyncadd (%p2308_p1), %s174_s29, 4294936576  ;;  %p2309_p11 = scmp.eq.s32.totalorder %s1508_s2, 0 }
  0x57   : > { %1436 = dma.done.wait (%p2309_p11), [#allocation7], 240   ;;  %p2310_p8 = pmov %p2309_p11 }
  0x58   : > { %v448_v0 = vlaneseq  ;;  %v444_v5 = vld [vmem:[#allocation6] sm:$0xff]  ;;  %v205_v10 = vld [vmem:[%s1627_s6 + $0x8] sm:$0xff]  ;;  %v206_v13 = vld [vmem:[%s1627_s6 + $0x10] sm:$0xff]  ;;  %s1019_s24 = sld [smem:[#allocation2]]  ;;  %vm1064_vm0 = vcmask 130112   ;;  %vm1071_vm1 = vcmask 195712  }
  0x59   : > { %1438 = vsyncadd (%p2310_p8), [#allocation7], 4294967056  ;;  %v204_v7 = vld [vmem:[%s1627_s6] sm:$0xff]  ;;  %v207_v17 = vld [vmem:[%s1627_s6 + $0x18] sm:$0xff]  ;;  %vm1078_vm2 = vcmask 261312   ;;  %vm1085_vm3 = vcmask 326912  }
  0x5a   : > { %v1638_v1 = vshrl.u32 %v448_v0, 7  ;;  %v234_v23 = vld [vmem:[%s1627_s6 + $0xf0] sm:$0xff]  ;;  %v235_v24 = vld [vmem:[%s1627_s6 + $0xf8] sm:$0xff]  ;;  %v208_v25 = vld [vmem:[%s1627_s6 + $0x20] sm:$0xff]  ;;  %vm1092_vm4 = vcmask 392512   ;;  %vm1099_vm5 = vcmask 458112  }
  0x5b   : > { %v445_v26 = vld [vmem:[#allocation6 + $0x8] sm:$0xff]  ;;  %v236_v30 = vld [vmem:[%s1627_s6 + $0x100] sm:$0xff]  ;;  %v210_v36 = vld [vmem:[%s1627_s6 + $0x30] sm:$0xff]  ;;  %vm1106_vm6 = vcmask 523712   ;;  %vm1113_vm7 = vcmask 589312   ;;  %vm1120_vm8 = vcmask 654912  }
  0x5c   : > { %v450_v2 = vsub.s32 0, %v1638_v1  ;;  %v454_v3 = vsub.s32 1, %v1638_v1  ;;  %v458_v4 = vsub.s32 2, %v1638_v1  ;;  %v462_v6 = vsub.s32 3, %v1638_v1  ;;  %v209_v31 = vld [vmem:[%s1627_s6 + $0x28] sm:$0xff]  ;;  %v211_v37 = vld [vmem:[%s1627_s6 + $0x38] sm:$0xff] }
  0x5d   : > { %v466_v12 = vsub.s32 4, %v1638_v1  ;;  %v470_v15 = vsub.s32 5, %v1638_v1  ;;  %v474_v18 = vsub.s32 6, %v1638_v1  ;;  %v478_v19 = vsub.s32 7, %v1638_v1  ;;  %v237_v42 = vld [vmem:[%s1627_s6 + $0x108] sm:$0xff]  ;;  %v212_v43 = vld [vmem:[%s1627_s6 + $0x40] sm:$0xff] }
  0x5e   : > { %v1645_v8 = vrot.slane %v444_v5, %v450_v2  ;;  %v1647_v9 = vrot.slane %v444_v5, %v454_v3  ;;  %v1650_v11 = vrot.slane %v444_v5, %v458_v4  ;;  %v1654_v14 = vrot.slane %v444_v5, %v462_v6  ;;  %v219_v48 = vld [vmem:[%s1627_s6 + $0x78] sm:$0xff]  ;;  %v220_v49 = vld [vmem:[%s1627_s6 + $0x80] sm:$0xff]  ;;  %v213_v50 = vld [vmem:[%s1627_s6 + $0x48] sm:$0xff]  ;;  %s1264_s27 = sshll.u32 %s1508_s2, 4  ;;  %s202_s5 = scalar_lea.vmem [#allocation8], %s1623_s10 }
  0x5f   : > { %v1662_v21 = vrot.slane %v444_v5, %v466_v12  ;;  %v1668_v27 = vrot.slane %v444_v5, %v470_v15  ;;  %v1673_v32 = vrot.slane %v444_v5, %v474_v18  ;;  %v1675_v33 = vrot.slane %v444_v5, %v478_v19  ;;  %v214_v51 = vld [vmem:[%s1627_s6 + $0x50] sm:$0xff]  ;;  %v215_v57 = vld [vmem:[%s1627_s6 + $0x58] sm:$0xff]  ;;  %v216_v58 = vld [vmem:[%s1627_s6 + $0x60] sm:$0xff]  ;;  %s1179_s8 = sshll.u32 %s202_s5, 4  ;;  %s2245_s13 = scalar_lea.hbm %s2292_s3, %s1264_s27  ;;  %s2247_s8 = int_to_ptr.vmem [resolvable:$true] %s1179_s8 }
  0x60   : > { %v523_v16 = vmul.f32 %v1645_v8, %v204_v7  ;;  %v524_v20 = vmul.f32 %v1647_v9, %v205_v10  ;;  %v525_v22 = vmul.f32 %v1650_v11, %v206_v13  ;;  %v526_v28 = vmul.f32 %v1654_v14, %v207_v17  ;;  %v238_v56 = vld [vmem:[%s1627_s6 + $0x110] sm:$0xff]  ;;  %v221_v63 = vld [vmem:[%s1627_s6 + $0x88] sm:$0xff]  ;;  %s1167_s18 = scalar_lea.sflag [#allocation5], %s1623_s10  ;;  %s1387_s20 = scalar_lea.vmem %s2247_s8, 16 }
  0x61   : > { %v553_v34 = vmul.f32 %v1645_v8, %v234_v23  ;;  %v554_v35 = vmul.f32 %v1647_v9, %v235_v24  ;;  %v1681_v38 = vrot.slane %v445_v26, %v450_v2  ;;  %v1683_v39 = vrot.slane %v445_v26, %v454_v3  ;;  %v217_v2 = vld [vmem:[%s1627_s6 + $0x68] sm:$0xff]  ;;  %v218_v3 = vld [vmem:[%s1627_s6 + $0x70] sm:$0xff]  ;;  %p1388_p9 = scmp.ne.s32.totalorder %s2247_s8, %s1387_s20  ;;  %p2311_p10 = scmp.ne.s32.totalorder %s2300_s25, 0 }
  0x62   : > { %v763_v29 = vadd.f32 %v524_v20, %v523_v16  ;;  %v527_v40 = vmul.f32 %v1662_v21, %v208_v25  ;;  %v1688_v44 = vrot.slane %v445_v26, %v458_v4  ;;  %v1690_v45 = vrot.slane %v445_v26, %v462_v6  ;;  %v239_v6 = vld [vmem:[%s1627_s6 + $0x118] sm:$0xff]  ;;  %v241_v23 = vld [vmem:[%s1627_s6 + $0x128] sm:$0xff]  ;;  %v242_v24 = vld [vmem:[%s1627_s6 + $0x130] sm:$0xff]  ;;  %s1463_s2 = smov [#allocation8]  }
  0x63   : > { %v1692_v46 = vrot.slane %v445_v26, %v466_v12  ;;  %v555_v47 = vmul.f32 %v1650_v11, %v236_v30  ;;  %v1699_v52 = vrot.slane %v445_v26, %v470_v15  ;;  %v1701_v53 = vrot.slane %v445_v26, %v474_v18  ;;  %v240_v15 = vld [vmem:[%s1627_s6 + $0x120] sm:$0xff]  ;;  %v222_v18 = vld [vmem:[%s1627_s6 + $0x90] sm:$0xff]  ;;  %v223_v25 = vld [vmem:[%s1627_s6 + $0x98] sm:$0xff]  ;;  %p1389_p2 = pnand %p1388_p9, %p2311_p10  ;;  %s1391_s4 = sshll.u32 %s1463_s2, 4  ;;  %s1392_s4 = int_to_ptr.vmem [resolvable:$false] %s1391_s4 }
  0x64   : > { %v764_v41 = vadd.f32 %v763_v29, %v525_v22  ;;  %v528_v54 = vmul.f32 %v1668_v27, %v209_v31  ;;  %v529_v59 = vmul.f32 %v1673_v32, %v210_v36  ;;  %v530_v60 = vmul.f32 %v1675_v33, %v211_v37  ;;  %v243_v37 = vld [vmem:[%s1627_s6 + $0x138] sm:$0xff]  ;;  %s1393_s21 = scalar_lea.vmem %s1392_s4, 32  ;;  %p1394_p5 = scmp.lt.s32.totalorder %s2247_s8, %s1392_s4 }
  0x65   : > { %v556_v61 = vmul.f32 %v1654_v14, %v237_v42  ;;  %v795_v62 = vadd.f32 %v554_v35, %v553_v34  ;;  %v531_v4 = vmul.f32 %v1681_v38, %v212_v43  ;;  %v538_v7 = vmul.f32 %v1645_v8, %v219_v48  ;;  %v249_v34 = vld [vmem:[%s1627_s6 + $0x168] sm:$0xff]  ;;  %v250_v35 = vld [vmem:[%s1627_s6 + $0x170] sm:$0xff]  ;;  %p1390_p4 = pneg %p1389_p2  ;;  %p1395_p0 = scmp.lt.s32.totalorder %s1393_s21, %s1387_s20 }
  0x66   : > { %v765_v55 = vadd.f32 %v764_v41, %v526_v28  ;;  %v539_v10 = vmul.f32 %v1647_v9, %v220_v49  ;;  %v532_v12 = vmul.f32 %v1683_v39, %v213_v50  ;;  %v1719_v13 = vmul.f32 %v1688_v44, %v214_v51  ;;  %v245_v41 = vld [vmem:[%s1627_s6 + $0x148] sm:$0xff]  ;;  %v224_v51 = vld [vmem:[%s1627_s6 + $0xa0] sm:$0xff] }
  0x67   : > { %v557_v16 = vmul.f32 %v1662_v21, %v238_v56  ;;  %v796_v17 = vadd.f32 %v795_v62, %v555_v47  ;;  %v1725_v19 = vmul.f32 %v1690_v45, %v215_v57  ;;  %v1728_v20 = vmul.f32 %v1692_v46, %v216_v58  ;;  %v246_v57 = vld [vmem:[%s1627_s6 + $0x150] sm:$0xff]  ;;  %v247_v58 = vld [vmem:[%s1627_s6 + $0x158] sm:$0xff]  ;;  %p1396_p6 = por %p1395_p0, %p1394_p5 }
  0x68   : > { %v766_v5 = vadd.f32 %v765_v55, %v527_v40  ;;  %v540_v26 = vmul.f32 %v1650_v11, %v221_v63  ;;  %v1735_v28 = vmul.f32 %v1699_v52, %v217_v2  ;;  %v1738_v29 = vmul.f32 %v1701_v53, %v218_v3  ;;  %v244_v40 = vld [vmem:[%s1627_s6 + $0x140] sm:$0xff]  ;;  %v251_v55 = vld [vmem:[%s1627_s6 + $0x178] sm:$0xff] }
  0x69   : > { %v558_v30 = vmul.f32 %v1668_v27, %v239_v6  ;;  %v797_v31 = vadd.f32 %v796_v17, %v556_v61  ;;  %v559_v42 = vmul.f32 %v1673_v32, %v240_v15  ;;  %v541_v43 = vmul.f32 %v1654_v14, %v222_v18  ;;  %v226_v15 = vld [vmem:[%s1627_s6 + $0xb0] sm:$0xff]  ;;  %p1397_p13 = pnand %p1396_p6, %p1390_p4 }
  0x6a   : > { %v767_v22 = vadd.f32 %v766_v5, %v528_v54  ;;  %v779_v47 = vadd.f32 %v539_v10, %v538_v7  ;;  %v560_v48 = vmul.f32 %v1675_v33, %v241_v23  ;;  %v561_v49 = vmul.f32 %v1681_v38, %v242_v24  ;;  %v252_v7 = vld [vmem:[%s1627_s6 + $0x180] sm:$0xff] }
  0x6b   : > { %v798_v50 = vadd.f32 %v797_v31, %v557_v16  ;;  %v542_v54 = vmul.f32 %v1662_v21, %v223_v25  ;;  %v568_v62 = vmul.f32 %v1645_v8, %v249_v34  ;;  %v569_v63 = vmul.f32 %v1647_v9, %v250_v35  ;;  %v248_v10 = vld [vmem:[%s1627_s6 + $0x160] sm:$0xff]  ;;  %v227_v16 = vld [vmem:[%s1627_s6 + $0xb8] sm:$0xff] }
  0x6c   : > { %v768_v36 = vadd.f32 %v767_v22, %v529_v59  ;;  %v225_v59 = vld [vmem:[%s1627_s6 + $0xa8] sm:$0xff]  ;;  %v780_v61 = vadd.f32 %v779_v47, %v540_v26  ;;  %v562_v2 = vmul.f32 %v1683_v39, %v243_v37  ;;  %v563_v3 = vmul.f32 %v1688_v44, %v244_v40  ;;  %v228_v31 = vld [vmem:[%s1627_s6 + $0xc0] sm:$0xff] }
  0x6d   : > { %v1761_v5 = vmul.f32 %v1690_v45, %v245_v41  ;;  %v799_v6 = vadd.f32 %v798_v50, %v558_v30  ;;  %v543_v17 = vmul.f32 %v1668_v27, %v224_v51  ;;  %v570_v22 = vmul.f32 %v1650_v11, %v251_v55  ;;  %v253_v26 = vld [vmem:[%s1627_s6 + $0x188] sm:$0xff]  ;;  %v264_v37 = vld [vmem:[%s1627_s6 + $0x1e0] sm:$0xff]  ;;  %v254_v50 = vld [vmem:[%s1627_s6 + $0x190] sm:$0xff] }
  0x6e   : > { %v769_v56 = vadd.f32 %v768_v36, %v530_v60  ;;  %v781_v18 = vadd.f32 %v780_v61, %v541_v43  ;;  %v1770_v23 = vmul.f32 %v1692_v46, %v246_v57  ;;  %v1773_v24 = vmul.f32 %v1699_v52, %v247_v58  ;;  %v265_v40 = vld [vmem:[%s1627_s6 + $0x1e8] sm:$0xff]  ;;  %v266_v58 = vld [vmem:[%s1627_s6 + $0x1f0] sm:$0xff]  ;;  %v255_v61 = vld [vmem:[%s1627_s6 + $0x198] sm:$0xff] }
  0x6f   : > { %v800_v25 = vadd.f32 %v799_v6, %v559_v42  ;;  %v571_v35 = vmul.f32 %v1654_v14, %v252_v7  ;;  %v811_v36 = vadd.f32 %v569_v63, %v568_v62  ;;  %v1782_v41 = vmul.f32 %v1701_v53, %v248_v10  ;;  %v229_v51 = vld [vmem:[%s1627_s6 + $0xc8] sm:$0xff]  ;;  %v231_v6 = vld [vmem:[%s1627_s6 + $0xd8] sm:$0xff] }
  0x70   : > { %v770_v60 = vadd.f32 %v769_v56, %v531_v4  ;;  %v544_v4 = vmul.f32 %v1673_v32, %v225_v59  ;;  %v782_v34 = vadd.f32 %v781_v18, %v542_v54  ;;  %v545_v42 = vmul.f32 %v1675_v33, %v226_v15  ;;  %v230_v54 = vld [vmem:[%s1627_s6 + $0xd0] sm:$0xff]  ;;  %v267_v15 = vld [vmem:[%s1627_s6 + $0x1f8] sm:$0xff]  ;;  %v256_v18 = vld [vmem:[%s1627_s6 + $0x1a0] sm:$0xff] }
  0x71   : > { %v801_v43 = vadd.f32 %v800_v25, %v560_v48  ;;  %v546_v47 = vmul.f32 %v1681_v38, %v227_v16  ;;  %v572_v56 = vmul.f32 %v1662_v21, %v253_v26  ;;  %v812_v57 = vadd.f32 %v811_v36, %v570_v22 }
  0x72   : > { %v771_v30 = vadd.f32 %v770_v60, %v532_v12  ;;  %v783_v55 = vadd.f32 %v782_v34, %v543_v17  ;;  %v547_v48 = vmul.f32 %v1683_v39, %v228_v31  ;;  %v583_v62 = vmul.f32 %v1645_v8, %v264_v37  ;;  %v268_v31 = vld [vmem:[%s1627_s6 + $0x200] sm:$0xff] }
  0x73   : > { %v802_v59 = vadd.f32 %v801_v43, %v561_v49  ;;  %v584_v63 = vmul.f32 %v1647_v9, %v265_v40  ;;  %v573_v60 = vmul.f32 %v1668_v27, %v254_v50  ;;  %v813_v10 = vadd.f32 %v812_v57, %v571_v35  ;;  %v257_v35 = vld [vmem:[%s1627_s6 + $0x1a8] sm:$0xff]  ;;  %v258_v43 = vld [vmem:[%s1627_s6 + $0x1b0] sm:$0xff]  ;;  %v280_v57 = vld [vmem:[%s1627_s6 + $0x260] sm:$0xff] }
  0x74   : > { %v772_v12 = vadd.f32 %v771_v30, %v1719_v13  ;;  %v784_v7 = vadd.f32 %v783_v55, %v544_v4  ;;  %v548_v49 = vmul.f32 %v1688_v44, %v229_v51  ;;  %v549_v17 = vmul.f32 %v1690_v45, %v230_v54 }
  0x75   : > { %v803_v16 = vadd.f32 %v802_v59, %v562_v2  ;;  %v585_v22 = vmul.f32 %v1650_v11, %v266_v58  ;;  %v574_v4 = vmul.f32 %v1673_v32, %v255_v61  ;;  %v814_v30 = vadd.f32 %v813_v10, %v572_v56  ;;  %v279_v56 = vld [vmem:[%s1627_s6 + $0x258] sm:$0xff] }
  0x76   : > { %v773_v13 = vadd.f32 %v772_v12, %v1725_v19  ;;  %v232_v19 = vld [vmem:[%s1627_s6 + $0xe0] sm:$0xff]  ;;  %v785_v26 = vadd.f32 %v784_v7, %v545_v42  ;;  %v550_v2 = vmul.f32 %v1692_v46, %v231_v6  ;;  %v586_v36 = vmul.f32 %v1654_v14, %v267_v15  ;;  %v269_v12 = vld [vmem:[%s1627_s6 + $0x208] sm:$0xff]  ;;  %v271_v15 = vld [vmem:[%s1627_s6 + $0x218] sm:$0xff] }
  0x77   : > { %v804_v34 = vadd.f32 %v803_v16, %v563_v3  ;;  %v827_v37 = vadd.f32 %v584_v63, %v583_v62  ;;  %v575_v42 = vmul.f32 %v1675_v33, %v256_v18  ;;  %v815_v50 = vadd.f32 %v814_v30, %v573_v60  ;;  %v270_v62 = vld [vmem:[%s1627_s6 + $0x210] sm:$0xff]  ;;  %v259_v63 = vld [vmem:[%s1627_s6 + $0x1b8] sm:$0xff]  ;;  %v281_v60 = vld [vmem:[%s1627_s6 + $0x268] sm:$0xff] }
  0x78   : > { %v774_v25 = vadd.f32 %v773_v13, %v1728_v20  ;;  %v786_v20 = vadd.f32 %v785_v26, %v546_v47  ;;  %v551_v51 = vmul.f32 %v1699_v52, %v232_v19  ;;  %v587_v54 = vmul.f32 %v1662_v21, %v268_v31  ;;  %v233_v47 = vld [vmem:[%s1627_s6 + $0xe8] sm:$0xff]  ;;  %v282_v26 = vld [vmem:[%s1627_s6 + $0x270] sm:$0xff] }
  0x79   : > { %v805_v3 = vadd.f32 %v804_v34, %v1761_v5  ;;  %v828_v55 = vadd.f32 %v827_v37, %v585_v22  ;;  %v576_v59 = vmul.f32 %v1681_v38, %v257_v35  ;;  %v816_v61 = vadd.f32 %v815_v50, %v574_v4  ;;  %v262_v30 = vld [vmem:[%s1627_s6 + $0x1d0] sm:$0xff]  ;;  %v272_v35 = vld [vmem:[%s1627_s6 + $0x220] sm:$0xff]  ;;  %v273_v50 = vld [vmem:[%s1627_s6 + $0x228] sm:$0xff] }
  0x7a   : > { %v775_v40 = vadd.f32 %v774_v25, %v1735_v28  ;;  %v787_v58 = vadd.f32 %v786_v20, %v547_v48  ;;  %v577_v13 = vmul.f32 %v1683_v39, %v258_v43  ;;  %v588_v6 = vmul.f32 %v1668_v27, %v269_v12  ;;  %v260_v48 = vld [vmem:[%s1627_s6 + $0x1c0] sm:$0xff]  ;;  %v283_v43 = vld [vmem:[%s1627_s6 + $0x278] sm:$0xff] }
  0x7b   : > { %v806_v5 = vadd.f32 %v805_v3, %v1770_v23  ;;  %v829_v7 = vadd.f32 %v828_v55, %v586_v36  ;;  %v817_v10 = vadd.f32 %v816_v61, %v575_v42  ;;  %v598_v16 = vmul.f32 %v1645_v8, %v279_v56  ;;  %v295_v55 = vld [vmem:[%s1627_s6 + $0x2d8] sm:$0xff] }
  0x7c   : > { %v776_v28 = vadd.f32 %v775_v40, %v1738_v29  ;;  %v788_v29 = vadd.f32 %v787_v58, %v548_v49  ;;  %v599_v23 = vmul.f32 %v1647_v9, %v280_v57  ;;  %v552_v22 = vmul.f32 %v1701_v53, %v233_v47  ;;  %v261_v49 = vld [vmem:[%s1627_s6 + $0x1c8] sm:$0xff] }
  0x7d   : > { %v807_v18 = vadd.f32 %v806_v5, %v1773_v24  ;;  %v589_v25 = vmul.f32 %v1673_v32, %v270_v62  ;;  %v830_v19 = vadd.f32 %v829_v7, %v587_v54  ;;  %v578_v31 = vmul.f32 %v1688_v44, %v259_v63  ;;  %v294_v54 = vld [vmem:[%s1627_s6 + $0x2d0] sm:$0xff]  ;;  %v296_v5 = vld [vmem:[%s1627_s6 + $0x2e0] sm:$0xff]  ;;  %v263_v63 = vld [vmem:[%s1627_s6 + $0x1d8] sm:$0xff] }
  0x7e   : > { %777 = vadd.xlane.f32.xlu0 %v776_v28  ;;  %v789_v4 = vadd.f32 %v788_v29, %v549_v17  ;;  %v818_v34 = vadd.f32 %v817_v10, %v576_v59  ;;  %v600_v36 = vmul.f32 %v1650_v11, %v281_v60  ;;  %v579_v37 = vmul.f32 %v1690_v45, %v260_v48  ;;  %v274_v59 = vld [vmem:[%s1627_s6 + $0x230] sm:$0xff]  ;;  %v285_v7 = vld [vmem:[%s1627_s6 + $0x288] sm:$0xff]  ;;  %v275_v10 = vld [vmem:[%s1627_s6 + $0x238] sm:$0xff] }
  0x7f   : > { %v808_v24 = vadd.f32 %v807_v18, %v1782_v41  ;;  %v590_v40 = vmul.f32 %v1675_v33, %v271_v15  ;;  %v831_v20 = vadd.f32 %v830_v19, %v588_v6  ;;  %v601_v12 = vmul.f32 %v1654_v14, %v282_v26  ;;  %v276_v18 = vld [vmem:[%s1627_s6 + $0x240] sm:$0xff]  ;;  %v286_v26 = vld [vmem:[%s1627_s6 + $0x290] sm:$0xff] }
  0x80   : > { %v790_v17 = vadd.f32 %v789_v4, %v550_v2  ;;  %v819_v42 = vadd.f32 %v818_v34, %v577_v13  ;;  %v843_v3 = vadd.f32 %v599_v23, %v598_v16  ;;  %v580_v41 = vmul.f32 %v1692_v46, %v261_v49  ;;  %v284_v2 = vld [vmem:[%s1627_s6 + $0x280] sm:$0xff]  ;;  %v297_v23 = vld [vmem:[%s1627_s6 + $0x2e8] sm:$0xff] }
  0x81   : > { %809 = vadd.xlane.f32.xlu1 %v808_v24  ;;  %v581_v56 = vmul.f32 %v1699_v52, %v262_v30  ;;  %v591_v57 = vmul.f32 %v1681_v38, %v272_v35  ;;  %v832_v28 = vadd.f32 %v831_v20, %v589_v25  ;;  %v602_v61 = vmul.f32 %v1662_v21, %v283_v43  ;;  %v287_v30 = vld [vmem:[%s1627_s6 + $0x298] sm:$0xff]  ;;  %v298_v35 = vld [vmem:[%s1627_s6 + $0x2f0] sm:$0xff]  ;;  %v309_v20 = vld [vmem:[%s1627_s6 + $0x348] sm:$0xff] }
  0x82   : > { %v791_v47 = vadd.f32 %v790_v17, %v551_v51  ;;  %v820_v58 = vadd.f32 %v819_v42, %v578_v31  ;;  %v844_v62 = vadd.f32 %v843_v3, %v600_v36  ;;  %v592_v13 = vmul.f32 %v1683_v39, %v273_v50  ;;  %v310_v43 = vld [vmem:[%s1627_s6 + $0x350] sm:$0xff]  ;;  %v277_v42 = vld [vmem:[%s1627_s6 + $0x248] sm:$0xff] }
  0x83   : > { %v833_v6 = vadd.f32 %v832_v28, %v590_v40  ;;  %v613_v60 = vmul.f32 %v1645_v8, %v294_v54  ;;  %v614_v29 = vmul.f32 %v1647_v9, %v295_v55  ;;  %v603_v15 = vmul.f32 %v1668_v27, %v284_v2  ;;  %v299_v54 = vld [vmem:[%s1627_s6 + $0x2f8] sm:$0xff] }
  0x84   : > { %v792_v51 = vadd.f32 %v791_v47, %v552_v22  ;;  %v821_v48 = vadd.f32 %v820_v58, %v579_v37  ;;  %v845_v16 = vadd.f32 %v844_v62, %v601_v12  ;;  %v593_v25 = vmul.f32 %v1688_v44, %v274_v59  ;;  %v311_v47 = vld [vmem:[%s1627_s6 + $0x358] sm:$0xff] }
  0x85   : > { %v834_v19 = vadd.f32 %v833_v6, %v591_v57  ;;  %v615_v4 = vmul.f32 %v1650_v11, %v296_v5  ;;  %v582_v22 = vmul.f32 %v1701_v53, %v263_v63  ;;  %v604_v31 = vmul.f32 %v1673_v32, %v285_v7  ;;  %v289_v6 = vld [vmem:[%s1627_s6 + $0x2a8] sm:$0xff] }
  0x86   : > { %793 = vadd.xlane.f32.xlu0 %v792_v51  ;;  %v822_v49 = vadd.f32 %v821_v48, %v580_v41  ;;  %v846_v34 = vadd.f32 %v845_v16, %v602_v61  ;;  %v594_v36 = vmul.f32 %v1690_v45, %v275_v10  ;;  %v616_v37 = vmul.f32 %v1654_v14, %v297_v23  ;;  %v288_v41 = vld [vmem:[%s1627_s6 + $0x2a0] sm:$0xff]  ;;  %v290_v51 = vld [vmem:[%s1627_s6 + $0x2b0] sm:$0xff] }
  0x87   : > { %v835_v24 = vadd.f32 %v834_v19, %v592_v13  ;;  %v859_v40 = vadd.f32 %v614_v29, %v613_v60  ;;  %v595_v50 = vmul.f32 %v1692_v46, %v276_v18  ;;  %v605_v12 = vmul.f32 %v1675_v33, %v286_v26  ;;  %v300_v61 = vld [vmem:[%s1627_s6 + $0x300] sm:$0xff] }
  0x88   : > { %v823_v17 = vadd.f32 %v822_v49, %v581_v56  ;;  %v847_v3 = vadd.f32 %v846_v34, %v603_v15  ;;  %v606_v57 = vmul.f32 %v1681_v38, %v287_v30  ;;  %v617_v28 = vmul.f32 %v1662_v21, %v298_v35  ;;  %v278_v56 = vld [vmem:[%s1627_s6 + $0x250] sm:$0xff]  ;;  %v312_v29 = vld [vmem:[%s1627_s6 + $0x360] sm:$0xff]  ;;  %v301_v15 = vld [vmem:[%s1627_s6 + $0x308] sm:$0xff] }
  0x89   : > { %v836_v55 = vadd.f32 %v835_v24, %v593_v25  ;;  %v860_v2 = vadd.f32 %v859_v40, %v615_v4  ;;  %v628_v62 = vmul.f32 %v1645_v8, %v309_v20  ;;  %v629_v5 = vmul.f32 %v1647_v9, %v310_v43  ;;  %v302_v25 = vld [vmem:[%s1627_s6 + $0x310] sm:$0xff]  ;;  %v313_v4 = vld [vmem:[%s1627_s6 + $0x368] sm:$0xff]  ;;  %v324_v34 = vld [vmem:[%s1627_s6 + $0x3c0] sm:$0xff] }
  0x8a   : > { %v824_v58 = vadd.f32 %v823_v17, %v582_v22  ;;  %v848_v59 = vadd.f32 %v847_v3, %v604_v31  ;;  %v596_v63 = vmul.f32 %v1699_v52, %v277_v42  ;;  %v618_v7 = vmul.f32 %v1668_v27, %v299_v54  ;;  %v325_v35 = vld [vmem:[%s1627_s6 + $0x3c8] sm:$0xff]  ;;  %v291_v24 = vld [vmem:[%s1627_s6 + $0x2b8] sm:$0xff]  ;;  %v314_v43 = vld [vmem:[%s1627_s6 + $0x370] sm:$0xff] }
  0x8b   : > { %v837_v13 = vadd.f32 %v836_v55, %v594_v36  ;;  %v861_v60 = vadd.f32 %v860_v2, %v616_v37  ;;  %v607_v48 = vmul.f32 %v1683_v39, %v288_v41  ;;  %v630_v16 = vmul.f32 %v1650_v11, %v311_v47  ;;  %v292_v17 = vld [vmem:[%s1627_s6 + $0x2c0] sm:$0xff]  ;;  %v326_v55 = vld [vmem:[%s1627_s6 + $0x3d0] sm:$0xff]  ;;  %v315_v2 = vld [vmem:[%s1627_s6 + $0x378] sm:$0xff] }
  0x8c   : > { %825 = vadd.xlane.f32.xlu1 %v824_v58  ;;  %v849_v10 = vadd.f32 %v848_v59, %v605_v12  ;;  %v597_v23 = vmul.f32 %v1701_v53, %v278_v56  ;;  %v619_v19 = vmul.f32 %v1673_v32, %v300_v61  ;;  %v608_v22 = vmul.f32 %v1688_v44, %v289_v6  ;;  %v304_v61 = vld [vmem:[%s1627_s6 + $0x320] sm:$0xff]  ;;  %v305_v6 = vld [vmem:[%s1627_s6 + $0x328] sm:$0xff] }
  0x8d   : > { %v838_v18 = vadd.f32 %v837_v13, %v595_v50  ;;  %v862_v26 = vadd.f32 %v861_v60, %v617_v28  ;;  %v631_v30 = vmul.f32 %v1654_v14, %v312_v29  ;;  %v875_v31 = vadd.f32 %v629_v5, %v628_v62  ;;  %v303_v50 = vld [vmem:[%s1627_s6 + $0x318] sm:$0xff]  ;;  %v316_v29 = vld [vmem:[%s1627_s6 + $0x380] sm:$0xff] }
  0x8e   : > { %v850_v49 = vadd.f32 %v849_v10, %v606_v57  ;;  %v609_v37 = vmul.f32 %v1690_v45, %v290_v51  ;;  %v620_v40 = vmul.f32 %v1675_v33, %v301_v15  ;;  %v621_v12 = vmul.f32 %v1681_v38, %v302_v25  ;;  %v293_v57 = vld [vmem:[%s1627_s6 + $0x2c8] sm:$0xff]  ;;  %v306_v15 = vld [vmem:[%s1627_s6 + $0x330] sm:$0xff] }
  0x8f   : > { %v839_v36 = vadd.f32 %v838_v18, %v596_v63  ;;  %v863_v20 = vadd.f32 %v862_v26, %v618_v7  ;;  %v632_v3 = vmul.f32 %v1662_v21, %v313_v4  ;;  %v876_v54 = vadd.f32 %v875_v31, %v630_v16  ;;  %v327_v63 = vld [vmem:[%s1627_s6 + $0x3d8] sm:$0xff]  ;;  %v328_v18 = vld [vmem:[%s1627_s6 + $0x3e0] sm:$0xff]  ;;  %v317_v26 = vld [vmem:[%s1627_s6 + $0x388] sm:$0xff] }
  0x90   : > { %v851_v42 = vadd.f32 %v850_v49, %v607_v48  ;;  %v643_v47 = vmul.f32 %v1645_v8, %v324_v34  ;;  %v644_v58 = vmul.f32 %v1647_v9, %v325_v35  ;;  %v610_v56 = vmul.f32 %v1692_v46, %v291_v24  ;;  %v329_v4 = vld [vmem:[%s1627_s6 + $0x3e8] sm:$0xff]  ;;  %v340_v24 = vld [vmem:[%s1627_s6 + $0x440] sm:$0xff] }
  0x91   : > { %v840_v41 = vadd.f32 %v839_v36, %v597_v23  ;;  %v864_v28 = vadd.f32 %v863_v20, %v619_v19  ;;  %v633_v62 = vmul.f32 %v1668_v27, %v314_v43  ;;  %v877_v5 = vadd.f32 %v876_v54, %v631_v30  ;;  %v339_v36 = vld [vmem:[%s1627_s6 + $0x438] sm:$0xff]  ;;  %v318_v43 = vld [vmem:[%s1627_s6 + $0x390] sm:$0xff] }
  0x92   : > { %v852_v59 = vadd.f32 %v851_v42, %v608_v22  ;;  %v611_v13 = vmul.f32 %v1699_v52, %v292_v17  ;;  %v622_v7 = vmul.f32 %v1683_v39, %v303_v50  ;;  %v645_v51 = vmul.f32 %v1650_v11, %v326_v55  ;;  %v330_v54 = vld [vmem:[%s1627_s6 + $0x3f0] sm:$0xff] }
  0x93   : > { %841 = vadd.xlane.f32.xlu0 %v840_v41  ;;  %v865_v60 = vadd.f32 %v864_v28, %v620_v40  ;;  %v612_v48 = vmul.f32 %v1701_v53, %v293_v57  ;;  %v634_v16 = vmul.f32 %v1673_v32, %v315_v2  ;;  %v878_v23 = vadd.f32 %v877_v5, %v632_v3  ;;  %v341_v41 = vld [vmem:[%s1627_s6 + $0x448] sm:$0xff]  ;;  %v308_v57 = vld [vmem:[%s1627_s6 + $0x340] sm:$0xff]  ;;  %v319_v2 = vld [vmem:[%s1627_s6 + $0x398] sm:$0xff] }
  0x94   : > { %v853_v10 = vadd.f32 %v852_v59, %v609_v37  ;;  %v623_v25 = vmul.f32 %v1688_v44, %v304_v61  ;;  %v646_v22 = vmul.f32 %v1654_v14, %v327_v63  ;;  %v891_v49 = vadd.f32 %v644_v58, %v643_v47  ;;  %v307_v37 = vld [vmem:[%s1627_s6 + $0x338] sm:$0xff] }
  0x95   : > { %v866_v19 = vadd.f32 %v865_v60, %v621_v12  ;;  %v624_v31 = vmul.f32 %v1690_v45, %v305_v6  ;;  %v635_v34 = vmul.f32 %v1675_v33, %v316_v29  ;;  %v879_v35 = vadd.f32 %v878_v23, %v633_v62  ;;  %v331_v47 = vld [vmem:[%s1627_s6 + $0x3f8] sm:$0xff]  ;;  %v321_v60 = vld [vmem:[%s1627_s6 + $0x3a8] sm:$0xff]  ;;  %v332_v29 = vld [vmem:[%s1627_s6 + $0x400] sm:$0xff] }
  0x96   : > { %v854_v30 = vadd.f32 %v853_v10, %v610_v56  ;;  %v625_v40 = vmul.f32 %v1692_v46, %v306_v15  ;;  %v647_v17 = vmul.f32 %v1662_v21, %v328_v18  ;;  %v892_v42 = vadd.f32 %v891_v49, %v645_v51 }
  0x97   : > { %v867_v20 = vadd.f32 %v866_v19, %v622_v7  ;;  %v636_v12 = vmul.f32 %v1681_v38, %v317_v26  ;;  %v880_v3 = vadd.f32 %v879_v35, %v634_v16  ;;  %v648_v55 = vmul.f32 %v1668_v27, %v329_v4  ;;  %v320_v7 = vld [vmem:[%s1627_s6 + $0x3a0] sm:$0xff]  ;;  %v333_v26 = vld [vmem:[%s1627_s6 + $0x408] sm:$0xff] }
  0x98   : > { %v855_v50 = vadd.f32 %v854_v30, %v611_v13  ;;  %v893_v58 = vadd.f32 %v892_v42, %v646_v22  ;;  %v658_v56 = vmul.f32 %v1645_v8, %v339_v36  ;;  %v659_v59 = vmul.f32 %v1647_v9, %v340_v24  ;;  %v342_v13 = vld [vmem:[%s1627_s6 + $0x450] sm:$0xff] }
  0x99   : > { %v868_v28 = vadd.f32 %v867_v20, %v623_v25  ;;  %v626_v62 = vmul.f32 %v1699_v52, %v307_v37  ;;  %v637_v5 = vmul.f32 %v1683_v39, %v318_v43  ;;  %v881_v63 = vadd.f32 %v880_v3, %v635_v34  ;;  %v343_v25 = vld [vmem:[%s1627_s6 + $0x458] sm:$0xff]  ;;  %v354_v30 = vld [vmem:[%s1627_s6 + $0x4b0] sm:$0xff]  ;;  %v344_v37 = vld [vmem:[%s1627_s6 + $0x460] sm:$0xff] }
  0x9a   : > { %v856_v61 = vadd.f32 %v855_v50, %v612_v48  ;;  %v649_v51 = vmul.f32 %v1673_v32, %v330_v54  ;;  %v894_v10 = vadd.f32 %v893_v58, %v647_v17  ;;  %v660_v15 = vmul.f32 %v1650_v11, %v341_v41  ;;  %v322_v20 = vld [vmem:[%s1627_s6 + $0x3b0] sm:$0xff]  ;;  %v323_v43 = vld [vmem:[%s1627_s6 + $0x3b8] sm:$0xff]  ;;  %v345_v41 = vld [vmem:[%s1627_s6 + $0x468] sm:$0xff] }
  0x9b   : > { %v869_v6 = vadd.f32 %v868_v28, %v624_v31  ;;  %v627_v48 = vmul.f32 %v1701_v53, %v308_v57  ;;  %v638_v16 = vmul.f32 %v1688_v44, %v319_v2  ;;  %v882_v23 = vadd.f32 %v881_v63, %v636_v12  ;;  %v355_v31 = vld [vmem:[%s1627_s6 + $0x4b8] sm:$0xff]  ;;  %v356_v12 = vld [vmem:[%s1627_s6 + $0x4c0] sm:$0xff]  ;;  %v334_v54 = vld [vmem:[%s1627_s6 + $0x410] sm:$0xff] }
  0x9c   : > { %857 = vadd.xlane.f32.xlu1 %v856_v61  ;;  %v650_v18 = vmul.f32 %v1675_v33, %v331_v47  ;;  %v895_v4 = vadd.f32 %v894_v10, %v648_v55  ;;  %v661_v22 = vmul.f32 %v1654_v14, %v342_v13  ;;  %v907_v49 = vadd.f32 %v659_v59, %v658_v56  ;;  %v335_v47 = vld [vmem:[%s1627_s6 + $0x418] sm:$0xff]  ;;  %v357_v61 = vld [vmem:[%s1627_s6 + $0x4c8] sm:$0xff]  ;;  %v336_v13 = vld [vmem:[%s1627_s6 + $0x420] sm:$0xff] }
  0x9d   : > { %v870_v19 = vadd.f32 %v869_v6, %v625_v40  ;;  %v639_v34 = vmul.f32 %v1690_v45, %v320_v7  ;;  %v640_v35 = vmul.f32 %v1692_v46, %v321_v60  ;;  %v883_v36 = vadd.f32 %v882_v23, %v637_v5  ;;  %v346_v6 = vld [vmem:[%s1627_s6 + $0x470] sm:$0xff] }
  0x9e   : > { %v651_v24 = vmul.f32 %v1681_v38, %v332_v29  ;;  %v896_v17 = vadd.f32 %v895_v4, %v649_v51  ;;  %v662_v42 = vmul.f32 %v1662_v21, %v343_v25  ;;  %v908_v50 = vadd.f32 %v907_v49, %v660_v15  ;;  %v347_v51 = vld [vmem:[%s1627_s6 + $0x478] sm:$0xff]  ;;  %v337_v4 = vld [vmem:[%s1627_s6 + $0x428] sm:$0xff] }
  0x9f   : > { %v871_v40 = vadd.f32 %v870_v19, %v626_v62  ;;  %v884_v3 = vadd.f32 %v883_v36, %v638_v16  ;;  %v652_v55 = vmul.f32 %v1683_v39, %v333_v26  ;;  %v673_v57 = vmul.f32 %v1645_v8, %v354_v30  ;;  %v369_v19 = vld [vmem:[%s1627_s6 + $0x528] sm:$0xff]  ;;  %v370_v26 = vld [vmem:[%s1627_s6 + $0x530] sm:$0xff]  ;;  %v348_v36 = vld [vmem:[%s1627_s6 + $0x480] sm:$0xff] }
  0xa0   : > { %v674_v28 = vmul.f32 %v1647_v9, %v355_v31  ;;  %v897_v58 = vadd.f32 %v896_v17, %v650_v18  ;;  %v663_v56 = vmul.f32 %v1668_v27, %v344_v37  ;;  %v909_v59 = vadd.f32 %v908_v50, %v661_v22 }
  0xa1   : > { %v872_v2 = vadd.f32 %v871_v40, %v627_v48  ;;  %v641_v62 = vmul.f32 %v1699_v52, %v322_v20  ;;  %v642_v5 = vmul.f32 %v1701_v53, %v323_v43  ;;  %v885_v63 = vadd.f32 %v884_v3, %v639_v34  ;;  %v358_v48 = vld [vmem:[%s1627_s6 + $0x4d0] sm:$0xff]  ;;  %v359_v34 = vld [vmem:[%s1627_s6 + $0x4d8] sm:$0xff] }
  0xa2   : > { %v675_v7 = vmul.f32 %v1650_v11, %v356_v12  ;;  %v653_v60 = vmul.f32 %v1688_v44, %v334_v54  ;;  %v898_v29 = vadd.f32 %v897_v58, %v651_v24  ;;  %v664_v10 = vmul.f32 %v1673_v32, %v345_v41  ;;  %v371_v20 = vld [vmem:[%s1627_s6 + $0x538] sm:$0xff]  ;;  %v338_v43 = vld [vmem:[%s1627_s6 + $0x430] sm:$0xff]  ;;  %v360_v12 = vld [vmem:[%s1627_s6 + $0x4e0] sm:$0xff] }
  0xa3   : > { %873 = vadd.xlane.f32.xlu0 %v872_v2  ;;  %v910_v15 = vadd.f32 %v909_v59, %v662_v42  ;;  %v886_v16 = vadd.f32 %v885_v63, %v640_v35  ;;  %v654_v23 = vmul.f32 %v1690_v45, %v335_v47  ;;  %v676_v18 = vmul.f32 %v1654_v14, %v357_v61  ;;  %v349_v42 = vld [vmem:[%s1627_s6 + $0x488] sm:$0xff]  ;;  %v372_v2 = vld [vmem:[%s1627_s6 + $0x540] sm:$0xff]  ;;  %v350_v58 = vld [vmem:[%s1627_s6 + $0x490] sm:$0xff] }
  0xa4   : > { %v923_v25 = vadd.f32 %v674_v28, %v673_v57  ;;  %v655_v22 = vmul.f32 %v1692_v46, %v336_v13  ;;  %v899_v49 = vadd.f32 %v898_v29, %v652_v55  ;;  %v665_v30 = vmul.f32 %v1675_v33, %v346_v6 }
  0xa5   : > { %v911_v31 = vadd.f32 %v910_v15, %v663_v56  ;;  %v887_v35 = vadd.f32 %v886_v16, %v641_v62  ;;  %v666_v24 = vmul.f32 %v1681_v38, %v347_v51  ;;  %v677_v37 = vmul.f32 %v1662_v21, %v358_v48  ;;  %v351_v56 = vld [vmem:[%s1627_s6 + $0x498] sm:$0xff]  ;;  %v361_v62 = vld [vmem:[%s1627_s6 + $0x4e8] sm:$0xff]  ;;  %v384_v16 = vld [vmem:[%s1627_s6 + $0x5a0] sm:$0xff] }
  0xa6   : > { %v924_v40 = vadd.f32 %v923_v25, %v675_v7  ;;  %v900_v17 = vadd.f32 %v899_v49, %v653_v60  ;;  %v688_v3 = vmul.f32 %v1645_v8, %v369_v19  ;;  %v689_v54 = vmul.f32 %v1647_v9, %v370_v26  ;;  %v373_v60 = vld [vmem:[%s1627_s6 + $0x548] sm:$0xff]  ;;  %v352_v49 = vld [vmem:[%s1627_s6 + $0x4a0] sm:$0xff] }
  0xa7   : > { %v912_v50 = vadd.f32 %v911_v31, %v664_v10  ;;  %v888_v55 = vadd.f32 %v887_v35, %v642_v5  ;;  %v656_v41 = vmul.f32 %v1699_v52, %v337_v4  ;;  %v678_v57 = vmul.f32 %v1668_v27, %v359_v34  ;;  %v362_v10 = vld [vmem:[%s1627_s6 + $0x4f0] sm:$0xff]  ;;  %v363_v31 = vld [vmem:[%s1627_s6 + $0x4f8] sm:$0xff] }
  0xa8   : > { %v925_v28 = vadd.f32 %v924_v40, %v676_v18  ;;  %v901_v47 = vadd.f32 %v900_v17, %v654_v23  ;;  %v667_v59 = vmul.f32 %v1683_v39, %v348_v36  ;;  %v690_v63 = vmul.f32 %v1650_v11, %v371_v20  ;;  %v385_v23 = vld [vmem:[%s1627_s6 + $0x5a8] sm:$0xff]  ;;  %v374_v4 = vld [vmem:[%s1627_s6 + $0x550] sm:$0xff]  ;;  %v375_v20 = vld [vmem:[%s1627_s6 + $0x558] sm:$0xff] }
  0xa9   : > { %v913_v61 = vadd.f32 %v912_v50, %v665_v30  ;;  %889 = vadd.xlane.f32.xlu1 %v888_v55  ;;  %v657_v5 = vmul.f32 %v1701_v53, %v338_v43  ;;  %v668_v13 = vmul.f32 %v1688_v44, %v349_v42  ;;  %v679_v6 = vmul.f32 %v1673_v32, %v360_v12  ;;  %v386_v36 = vld [vmem:[%s1627_s6 + $0x5b0] sm:$0xff]  ;;  %v364_v12 = vld [vmem:[%s1627_s6 + $0x500] sm:$0xff]  ;;  %v387_v55 = vld [vmem:[%s1627_s6 + $0x5b8] sm:$0xff] }
  0xaa   : > { %v926_v7 = vadd.f32 %v925_v28, %v677_v37  ;;  %v902_v29 = vadd.f32 %v901_v47, %v655_v22  ;;  %v691_v15 = vmul.f32 %v1654_v14, %v372_v2  ;;  %v939_v48 = vadd.f32 %v689_v54, %v688_v3  ;;  %v376_v47 = vld [vmem:[%s1627_s6 + $0x560] sm:$0xff] }
  0xab   : > { %v914_v51 = vadd.f32 %v913_v61, %v666_v24  ;;  %v669_v18 = vmul.f32 %v1690_v45, %v350_v58  ;;  %v670_v25 = vmul.f32 %v1692_v46, %v351_v56  ;;  %v680_v19 = vmul.f32 %v1675_v33, %v361_v62  ;;  %v353_v24 = vld [vmem:[%s1627_s6 + $0x4a8] sm:$0xff]  ;;  %v366_v61 = vld [vmem:[%s1627_s6 + $0x510] sm:$0xff] }
  0xac   : > { %v927_v26 = vadd.f32 %v926_v7, %v678_v57  ;;  %v903_v22 = vadd.f32 %v902_v29, %v656_v41  ;;  %v692_v34 = vmul.f32 %v1662_v21, %v373_v60  ;;  %v940_v35 = vadd.f32 %v939_v48, %v690_v63  ;;  %v365_v57 = vld [vmem:[%s1627_s6 + $0x508] sm:$0xff] }
  0xad   : > { %v915_v30 = vadd.f32 %v914_v51, %v667_v59  ;;  %v681_v37 = vmul.f32 %v1681_v38, %v362_v10  ;;  %v703_v43 = vmul.f32 %v1645_v8, %v384_v16  ;;  %v704_v17 = vmul.f32 %v1647_v9, %v385_v23  ;;  %v377_v7 = vld [vmem:[%s1627_s6 + $0x568] sm:$0xff]  ;;  %v399_v23 = vld [vmem:[%s1627_s6 + $0x618] sm:$0xff] }
  0xae   : > { %v928_v40 = vadd.f32 %v927_v26, %v679_v6  ;;  %v904_v42 = vadd.f32 %v903_v22, %v657_v5  ;;  %v693_v3 = vmul.f32 %v1668_v27, %v374_v4  ;;  %v941_v54 = vadd.f32 %v940_v35, %v691_v15  ;;  %v388_v5 = vld [vmem:[%s1627_s6 + $0x5c0] sm:$0xff]  ;;  %v389_v60 = vld [vmem:[%s1627_s6 + $0x5c8] sm:$0xff]  ;;  %v378_v22 = vld [vmem:[%s1627_s6 + $0x570] sm:$0xff] }
  0xaf   : > { %v916_v50 = vadd.f32 %v915_v30, %v668_v13  ;;  %v671_v41 = vmul.f32 %v1699_v52, %v352_v49  ;;  %v682_v28 = vmul.f32 %v1683_v39, %v363_v31  ;;  %v705_v58 = vmul.f32 %v1650_v11, %v386_v36  ;;  %v390_v35 = vld [vmem:[%s1627_s6 + $0x5d0] sm:$0xff] }
  0xb0   : > { %v929_v2 = vadd.f32 %v928_v40, %v680_v19  ;;  %905 = vadd.xlane.f32.xlu0 %v904_v42  ;;  %v672_v56 = vmul.f32 %v1701_v53, %v353_v24  ;;  %v694_v62 = vmul.f32 %v1673_v32, %v375_v20  ;;  %v942_v63 = vadd.f32 %v941_v54, %v692_v34  ;;  %v367_v19 = vld [vmem:[%s1627_s6 + $0x518] sm:$0xff]  ;;  %v401_v24 = vld [vmem:[%s1627_s6 + $0x628] sm:$0xff] }
  0xb1   : > { %v917_v59 = vadd.f32 %v916_v50, %v669_v18  ;;  %v683_v13 = vmul.f32 %v1688_v44, %v364_v12  ;;  %v706_v29 = vmul.f32 %v1654_v14, %v387_v55  ;;  %v955_v51 = vadd.f32 %v704_v17, %v703_v43  ;;  %v400_v18 = vld [vmem:[%s1627_s6 + $0x620] sm:$0xff]  ;;  %v379_v20 = vld [vmem:[%s1627_s6 + $0x578] sm:$0xff] }
  0xb2   : > { %v930_v6 = vadd.f32 %v929_v2, %v681_v37  ;;  %v684_v15 = vmul.f32 %v1690_v45, %v365_v57  ;;  %v695_v48 = vmul.f32 %v1675_v33, %v376_v47  ;;  %v943_v16 = vadd.f32 %v942_v63, %v693_v3  ;;  %v368_v37 = vld [vmem:[%s1627_s6 + $0x520] sm:$0xff]  ;;  %v391_v43 = vld [vmem:[%s1627_s6 + $0x5d8] sm:$0xff]  ;;  %v381_v2 = vld [vmem:[%s1627_s6 + $0x588] sm:$0xff] }
  0xb3   : > { %v918_v10 = vadd.f32 %v917_v59, %v670_v25  ;;  %v685_v26 = vmul.f32 %v1692_v46, %v366_v61  ;;  %v707_v49 = vmul.f32 %v1662_v21, %v388_v5  ;;  %v956_v30 = vadd.f32 %v955_v51, %v705_v58  ;;  %v392_v47 = vld [vmem:[%s1627_s6 + $0x5e0] sm:$0xff] }
  0xb4   : > { %v931_v4 = vadd.f32 %v930_v6, %v682_v28  ;;  %v696_v31 = vmul.f32 %v1681_v38, %v377_v7  ;;  %v944_v34 = vadd.f32 %v943_v16, %v694_v62  ;;  %v708_v36 = vmul.f32 %v1668_v27, %v389_v60  ;;  %v380_v28 = vld [vmem:[%s1627_s6 + $0x580] sm:$0xff]  ;;  %v393_v7 = vld [vmem:[%s1627_s6 + $0x5e8] sm:$0xff] }
  0xb5   : > { %v919_v25 = vadd.f32 %v918_v10, %v671_v41  ;;  %v957_v17 = vadd.f32 %v956_v30, %v706_v29  ;;  %v718_v42 = vmul.f32 %v1645_v8, %v399_v23  ;;  %v719_v50 = vmul.f32 %v1647_v9, %v400_v18  ;;  %v402_v41 = vld [vmem:[%s1627_s6 + $0x630] sm:$0xff] }
  0xb6   : > { %v932_v40 = vadd.f32 %v931_v4, %v683_v13  ;;  %v686_v3 = vmul.f32 %v1699_v52, %v367_v19  ;;  %v697_v54 = vmul.f32 %v1683_v39, %v378_v22  ;;  %v945_v55 = vadd.f32 %v944_v34, %v695_v48  ;;  %v403_v13 = vld [vmem:[%s1627_s6 + $0x638] sm:$0xff]  ;;  %v414_v10 = vld [vmem:[%s1627_s6 + $0x690] sm:$0xff]  ;;  %v404_v19 = vld [vmem:[%s1627_s6 + $0x640] sm:$0xff] }
  0xb7   : > { %v920_v12 = vadd.f32 %v919_v25, %v672_v56  ;;  %v709_v58 = vmul.f32 %v1673_v32, %v390_v35  ;;  %v958_v59 = vadd.f32 %v957_v17, %v707_v49  ;;  %v720_v61 = vmul.f32 %v1650_v11, %v401_v24  ;;  %v382_v4 = vld [vmem:[%s1627_s6 + $0x590] sm:$0xff]  ;;  %v383_v22 = vld [vmem:[%s1627_s6 + $0x598] sm:$0xff]  ;;  %v405_v24 = vld [vmem:[%s1627_s6 + $0x648] sm:$0xff] }
  0xb8   : > { %v933_v57 = vadd.f32 %v932_v40, %v684_v15  ;;  %v687_v56 = vmul.f32 %v1701_v53, %v368_v37  ;;  %v698_v62 = vmul.f32 %v1688_v44, %v379_v20  ;;  %v946_v63 = vadd.f32 %v945_v55, %v696_v31  ;;  %v415_v15 = vld [vmem:[%s1627_s6 + $0x698] sm:$0xff]  ;;  %v416_v31 = vld [vmem:[%s1627_s6 + $0x6a0] sm:$0xff]  ;;  %v394_v35 = vld [vmem:[%s1627_s6 + $0x5f0] sm:$0xff] }
  0xb9   : > { %921 = vadd.xlane.f32.xlu1 %v920_v12  ;;  %v710_v5 = vmul.f32 %v1675_v33, %v391_v43  ;;  %v959_v60 = vadd.f32 %v958_v59, %v708_v36  ;;  %v721_v29 = vmul.f32 %v1654_v14, %v402_v41  ;;  %v971_v51 = vadd.f32 %v719_v50, %v718_v42  ;;  %v395_v43 = vld [vmem:[%s1627_s6 + $0x5f8] sm:$0xff]  ;;  %v417_v12 = vld [vmem:[%s1627_s6 + $0x6a8] sm:$0xff]  ;;  %v396_v41 = vld [vmem:[%s1627_s6 + $0x600] sm:$0xff] }
  0xba   : > { %v934_v6 = vadd.f32 %v933_v57, %v685_v26  ;;  %v699_v48 = vmul.f32 %v1690_v45, %v380_v28  ;;  %v700_v16 = vmul.f32 %v1692_v46, %v381_v2  ;;  %v947_v23 = vadd.f32 %v946_v63, %v697_v54  ;;  %v406_v57 = vld [vmem:[%s1627_s6 + $0x650] sm:$0xff] }
  0xbb   : > { %v711_v18 = vmul.f32 %v1681_v38, %v392_v47  ;;  %v960_v49 = vadd.f32 %v959_v60, %v709_v58  ;;  %v722_v30 = vmul.f32 %v1662_v21, %v403_v13  ;;  %v972_v25 = vadd.f32 %v971_v51, %v720_v61  ;;  %v407_v58 = vld [vmem:[%s1627_s6 + $0x658] sm:$0xff]  ;;  %v397_v60 = vld [vmem:[%s1627_s6 + $0x608] sm:$0xff] }
  0xbc   : > { %v935_v26 = vadd.f32 %v934_v6, %v686_v3  ;;  %v948_v34 = vadd.f32 %v947_v23, %v698_v62  ;;  %v712_v36 = vmul.f32 %v1683_v39, %v393_v7  ;;  %v733_v37 = vmul.f32 %v1645_v8, %v414_v10  ;;  %v429_v6 = vld [vmem:[%s1627_s6 + $0x708] sm:$0xff]  ;;  %v430_v7 = vld [vmem:[%s1627_s6 + $0x710] sm:$0xff]  ;;  %v408_v23 = vld [vmem:[%s1627_s6 + $0x660] sm:$0xff] }
  0xbd   : > { %v734_v40 = vmul.f32 %v1647_v9, %v415_v15  ;;  %v961_v17 = vadd.f32 %v960_v49, %v710_v5  ;;  %v723_v42 = vmul.f32 %v1668_v27, %v404_v19  ;;  %v973_v50 = vadd.f32 %v972_v25, %v721_v29 }
  0xbe   : > { %v936_v20 = vadd.f32 %v935_v26, %v687_v56  ;;  %v701_v3 = vmul.f32 %v1699_v52, %v382_v4  ;;  %v702_v54 = vmul.f32 %v1701_v53, %v383_v22  ;;  %v949_v55 = vadd.f32 %v948_v34, %v699_v48  ;;  %v418_v56 = vld [vmem:[%s1627_s6 + $0x6b0] sm:$0xff]  ;;  %v419_v48 = vld [vmem:[%s1627_s6 + $0x6b8] sm:$0xff] }
  0xbf   : > { %v735_v28 = vmul.f32 %v1650_v11, %v416_v31  ;;  %v713_v2 = vmul.f32 %v1688_v44, %v394_v35  ;;  %v962_v47 = vadd.f32 %v961_v17, %v711_v18  ;;  %v724_v59 = vmul.f32 %v1673_v32, %v405_v24  ;;  %v431_v4 = vld [vmem:[%s1627_s6 + $0x718] sm:$0xff]  ;;  %v398_v22 = vld [vmem:[%s1627_s6 + $0x610] sm:$0xff]  ;;  %v420_v31 = vld [vmem:[%s1627_s6 + $0x6c0] sm:$0xff] }
  0xc0   : > { %937 = vadd.xlane.f32.xlu0 %v936_v20  ;;  %v974_v61 = vadd.f32 %v973_v50, %v722_v30  ;;  %v950_v62 = vadd.f32 %v949_v55, %v700_v16  ;;  %v714_v63 = vmul.f32 %v1690_v45, %v395_v43  ;;  %v736_v5 = vmul.f32 %v1654_v14, %v417_v12  ;;  %v409_v30 = vld [vmem:[%s1627_s6 + $0x668] sm:$0xff]  ;;  %v432_v20 = vld [vmem:[%s1627_s6 + $0x720] sm:$0xff]  ;;  %v410_v17 = vld [vmem:[%s1627_s6 + $0x670] sm:$0xff] }
  0xc1   : > { %v987_v13 = vadd.f32 %v734_v40, %v733_v37  ;;  %v715_v29 = vmul.f32 %v1692_v46, %v396_v41  ;;  %v963_v51 = vadd.f32 %v962_v47, %v712_v36  ;;  %v725_v10 = vmul.f32 %v1675_v33, %v406_v57  ;;  %v421_v12 = vld [vmem:[%s1627_s6 + $0x6c8] sm:$0xff]  ;;  %v422_v47 = vld [vmem:[%s1627_s6 + $0x6d0] sm:$0xff] }
  0xc2   : > { %v975_v15 = vadd.f32 %v974_v61, %v723_v42  ;;  %v951_v16 = vadd.f32 %v950_v62, %v701_v3  ;;  %v726_v18 = vmul.f32 %v1681_v38, %v407_v58  ;;  %v737_v19 = vmul.f32 %v1662_v21, %v418_v56  ;;  %v433_v41 = vld [vmem:[%s1627_s6 + $0x728] sm:$0xff]  ;;  %v434_v62 = vld [vmem:[%s1627_s6 + $0x730] sm:$0xff] }
  0xc3   : > { %v988_v26 = vadd.f32 %v987_v13, %v735_v28  ;;  %v964_v49 = vadd.f32 %v963_v51, %v713_v2  ;;  %v748_v34 = vmul.f32 %v1645_v8, %v429_v6  ;;  %v749_v35 = vmul.f32 %v1647_v9, %v430_v7  ;;  %v411_v28 = vld [vmem:[%s1627_s6 + $0x678] sm:$0xff] }
  0xc4   : > { %v976_v25 = vadd.f32 %v975_v15, %v724_v59  ;;  %v952_v36 = vadd.f32 %v951_v16, %v702_v54  ;;  %v716_v24 = vmul.f32 %v1699_v52, %v397_v60  ;;  %v738_v37 = vmul.f32 %v1668_v27, %v419_v48  ;;  %v423_v13 = vld [vmem:[%s1627_s6 + $0x6d8] sm:$0xff]  ;;  %v412_v60 = vld [vmem:[%s1627_s6 + $0x680] sm:$0xff] }
  0xc5   : > { %v989_v40 = vadd.f32 %v988_v26, %v736_v5  ;;  %v965_v43 = vadd.f32 %v964_v49, %v714_v63  ;;  %v727_v42 = vmul.f32 %v1683_v39, %v408_v23  ;;  %v750_v8 = vmul.f32 %v1650_v11, %v431_v4  ;;  %v424_v16 = vld [vmem:[%s1627_s6 + $0x6e0] sm:$0xff] }
  0xc6   : > { %v977_v50 = vadd.f32 %v976_v25, %v725_v10  ;;  %953 = vadd.xlane.f32.xlu1 %v952_v36  ;;  %v717_v9 = vmul.f32 %v1701_v53, %v398_v22  ;;  %v728_v3 = vmul.f32 %v1688_v44, %v409_v30  ;;  %v739_v54 = vmul.f32 %v1673_v32, %v420_v31  ;;  %v435_v10 = vld [vmem:[%s1627_s6 + $0x738] sm:$0xff]  ;;  %v436_v4 = vld [vmem:[%s1627_s6 + $0x740] sm:$0xff]  ;;  %v425_v30 = vld [vmem:[%s1627_s6 + $0x6e8] sm:$0xff] }
  0xc7   : > { %v990_v55 = vadd.f32 %v989_v40, %v737_v19  ;;  %v966_v57 = vadd.f32 %v965_v43, %v715_v29  ;;  %v751_v58 = vmul.f32 %v1654_v14, %v432_v20  ;;  %v1003_v11 = vadd.f32 %v749_v35, %v748_v34  ;;  %v413_v19 = vld [vmem:[%s1627_s6 + $0x688] sm:$0xff] }
  0xc8   : > { %v978_v2 = vadd.f32 %v977_v50, %v726_v18  ;;  %v729_v59 = vmul.f32 %v1690_v45, %v410_v17  ;;  %v740_v61 = vmul.f32 %v1675_v33, %v421_v12  ;;  %v752_v6 = vmul.f32 %v1662_v21, %v433_v41  ;;  %v437_v35 = vld [vmem:[%s1627_s6 + $0x748] sm:$0xff]  ;;  %v427_v50 = vld [vmem:[%s1627_s6 + $0x6f8] sm:$0xff]  ;;  %v428_v41 = vld [vmem:[%s1627_s6 + $0x700] sm:$0xff] }
  0xc9   : > { %v991_v56 = vadd.f32 %v990_v55, %v738_v37  ;;  %v967_v63 = vadd.f32 %v966_v57, %v716_v24  ;;  %v1004_v7 = vadd.f32 %v1003_v11, %v750_v8  ;;  %v730_v29 = vmul.f32 %v1692_v46, %v411_v28  ;;  %v426_v37 = vld [vmem:[%s1627_s6 + $0x6f0] sm:$0xff] }
  0xca   : > { %v979_v5 = vadd.f32 %v978_v2, %v727_v42  ;;  %v741_v14 = vmul.f32 %v1681_v38, %v422_v47  ;;  %v753_v23 = vmul.f32 %v1668_v27, %v434_v62  ;;  %v742_v21 = vmul.f32 %v1683_v39, %v423_v13  ;;  %v438_v42 = vld [vmem:[%s1627_s6 + $0x750] sm:$0xff]  ;;  %v440_v47 = vld [vmem:[%s1627_s6 + $0x760] sm:$0xff] }
  0xcb   : > { %v992_v51 = vadd.f32 %v991_v56, %v739_v54  ;;  %v968_v15 = vadd.f32 %v967_v63, %v717_v9  ;;  %v1005_v18 = vadd.f32 %v1004_v7, %v751_v58  ;;  %v731_v22 = vmul.f32 %v1699_v52, %v412_v60  ;;  %v439_v54 = vld [vmem:[%s1627_s6 + $0x758] sm:$0xff] }
  0xcc   : > { %v980_v48 = vadd.f32 %v979_v5, %v728_v3  ;;  %v754_v25 = vmul.f32 %v1673_v32, %v435_v10  ;;  %v743_v34 = vmul.f32 %v1688_v44, %v424_v16  ;;  %v732_v36 = vmul.f32 %v1701_v53, %v413_v19  ;;  %v442_v5 = vld [vmem:[%s1627_s6 + $0x770] sm:$0xff]  ;;  %v443_v7 = vld [vmem:[%s1627_s6 + $0x778] sm:$0xff] }
  0xcd   : > { %v993_v26 = vadd.f32 %v992_v51, %v740_v61  ;;  %969 = vadd.xlane.f32.xlu0 %v968_v15  ;;  %v1006_v31 = vadd.f32 %v1005_v18, %v752_v6  ;;  %v755_v40 = vmul.f32 %v1675_v33, %v436_v4  ;;  %v744_v43 = vmul.f32 %v1690_v45, %v425_v30  ;;  %v441_v61 = vld [vmem:[%s1627_s6 + $0x768] sm:$0xff] }
  0xce   : > { %v981_v49 = vadd.f32 %v980_v48, %v729_v59  ;;  %v756_v12 = vmul.f32 %v1681_v38, %v437_v35  ;;  %v745_v9 = vmul.f32 %v1692_v46, %v426_v37  ;;  %v757_v33 = vmul.f32 %v1683_v39, %v438_v42 }
  0xcf   : > { %v994_v27 = vadd.f32 %v993_v26, %v741_v14  ;;  %v1007_v20 = vadd.f32 %v1006_v31, %v753_v23  ;;  %v746_v28 = vmul.f32 %v1699_v52, %v427_v50  ;;  %v758_v38 = vmul.f32 %v1688_v44, %v439_v54 }
  0xd0   : > { %v982_v24 = vadd.f32 %v981_v49, %v730_v29  ;;  %v747_v11 = vmul.f32 %v1701_v53, %v428_v41  ;;  %v759_v56 = vmul.f32 %v1690_v45, %v440_v47  ;;  %v760_v39 = vmul.f32 %v1692_v46, %v441_v61 }
  0xd1   : > { %v995_v17 = vadd.f32 %v994_v27, %v742_v21  ;;  %v1008_v8 = vadd.f32 %v1007_v20, %v754_v25  ;;  %v761_v60 = vmul.f32 %v1699_v52, %v442_v5  ;;  %v762_v44 = vmul.f32 %v1701_v53, %v443_v7 }
  0xd2   : > { %v983_v32 = vadd.f32 %v982_v24, %v731_v22  ;;  %v2186_v16 = vand.u32 127, %v448_v0  ;;  %v2189_v52 = vstv %s1019_s24  ;;  %vm1127_vm9 = vcmask 720512  }
  0xd3   : > { %v996_v3 = vadd.f32 %v995_v17, %v743_v34  ;;  %v1009_v57 = vadd.f32 %v1008_v8, %v755_v40  ;;  %vm1134_vm10 = vcmask 786112   ;;  %vm1141_vm11 = vcmask 851712  }
  0xd4   : > { %v984_v55 = vadd.f32 %v983_v32, %v732_v36  ;;  %v1059_v23 = vadd.s32 4294967288, %v2186_v16  ;;  %v1066_v21 = vadd.s32 4294967280, %v2186_v16  ;;  %v1057_v4 = vsub.s32 %v2186_v16, %v1638_v1 }
  0xd5   : > { %v997_v2 = vadd.f32 %v996_v3, %v744_v43  ;;  %v1010_v58 = vadd.f32 %v1009_v57, %v756_v12  ;;  %v1073_v0 = vadd.s32 4294967272, %v2186_v16  ;;  %v1080_v34 = vadd.s32 4294967264, %v2186_v16 }
  0xd6   : > { %985 = vadd.xlane.f32.xlu1 %v984_v55  ;;  %v1062_v19 = vsub.s32 %v1059_v23, %v1638_v1  ;;  %v1069_v25 = vsub.s32 %v1066_v21, %v1638_v1  ;;  %v1087_v40 = vadd.s32 4294967256, %v2186_v16  ;;  %v1094_v42 = vadd.s32 4294967248, %v2186_v16 }
  0xd7   : > { %v998_v59 = vadd.f32 %v997_v2, %v745_v9  ;;  %v1011_v62 = vadd.f32 %v1010_v58, %v757_v33  ;;  %v1076_v35 = vsub.s32 %v1073_v0, %v1638_v1  ;;  %v1083_v43 = vsub.s32 %v1080_v34, %v1638_v1 }
  0xd8   : > { %v1101_v8 = vadd.s32 4294967240, %v2186_v16  ;;  %v1090_v9 = vsub.s32 %v1087_v40, %v1638_v1  ;;  %v1108_v54 = vadd.s32 4294967232, %v2186_v16  ;;  %v1097_v41 = vsub.s32 %v1094_v42, %v1638_v1 }
  0xd9   : > { %v999_v63 = vadd.f32 %v998_v59, %v746_v28  ;;  %v1012_v13 = vadd.f32 %v1011_v62, %v758_v38  ;;  %v1129_v5 = vadd.s32 4294967208, %v2186_v16  ;;  %vm1148_vm12 = vcmask 917312  }
  0xda   : > { %v1104_v2 = vsub.s32 %v1101_v8, %v1638_v1  ;;  %v1111_v58 = vsub.s32 %v1108_v54, %v1638_v1  ;;  %vm1155_vm13 = vcmask 982912   ;;  %vm1162_vm14 = vcmask 1048512  }
  0xdb   : > { %v1000_v6 = vadd.f32 %v999_v63, %v747_v11  ;;  %v1013_v29 = vadd.f32 %v1012_v13, %v759_v56  ;;  %v1115_v11 = vadd.s32 4294967224, %v2186_v16  ;;  %v1122_v63 = vadd.s32 4294967216, %v2186_v16 }
  0xdc   : > { %v1136_v13 = vadd.s32 4294967200, %v2186_v16 }
  0xdd   : > { %1001 = vadd.xlane.f32.xlu0 %v1000_v6  ;;  %v1014_v14 = vadd.f32 %v1013_v29, %v760_v39 }
  0xdf   : > { %v1015_v51 = vadd.f32 %v1014_v14, %v761_v60  ;;  %v1118_v60 = vsub.s32 %v1115_v11, %v1638_v1 }
  0xe1   : > { %v1016_v10 = vadd.f32 %v1015_v51, %v762_v44  ;;  %v1125_v51 = vsub.s32 %v1122_v63, %v1638_v1 }
  0xe3   : > { %1017 = vadd.xlane.f32.xlu1 %v1016_v10 }
 0x10b   : > { %v778_v15 = vpop.xlane.xlu0 %777 }
 0x10c   : > { %v1021_v22 = vsub.f32 %v778_v15, %v2189_v52 }
 0x10e   : > { %v810_v45 = vpop.xlane.xlu1 %809  ;;  %v1058_v27 = vrot.slane %v1021_v22, %v1057_v4  ;;  %v1150_v22 = vadd.s32 4294967184, %v2186_v16 }
 0x10f   : > { %v1023_v31 = vsub.f32 %v810_v45, %v2189_v52  ;;  %v1132_v45 = vsub.s32 %v1129_v5, %v1638_v1 }
 0x111   : > { %v1070_v20 = vrot.slane %v1023_v31, %v1069_v25 }
 0x113   : > { %v794_v48 = vpop.xlane.xlu0 %793 }
 0x114   : > { %v1022_v53 = vsub.f32 %v794_v48, %v2189_v52  ;;  %v1139_v48 = vsub.s32 %v1136_v13, %v1638_v1 }
 0x116   : > { %v1063_v49 = vrot.slane %v1022_v53, %v1062_v19  ;;  %v1143_v19 = vadd.s32 4294967192, %v2186_v16 }
 0x118   : > { %v1065_v37 = vsel %vm1064_vm0, %v1063_v49, %v1058_v27 }
 0x119   : > { %v826_v46 = vpop.xlane.xlu1 %825  ;;  %v1072_v12 = vsel %vm1071_vm1, %v1070_v20, %v1065_v37 }
 0x11a   : > { %v1024_v36 = vsub.f32 %v826_v46, %v2189_v52 }
 0x11c   : > { %v1077_v32 = vrot.slane %v1024_v36, %v1076_v35  ;;  %v1153_v35 = vsub.s32 %v1150_v22, %v1638_v1 }
 0x11e   : > { %v1079_v28 = vsel %vm1078_vm2, %v1077_v32, %v1072_v12 }
 0x120   : > { %v842_v18 = vpop.xlane.xlu0 %841 }
 0x121   : > { %v1025_v17 = vsub.f32 %v842_v18, %v2189_v52 }
 0x123   : > { %v1084_v55 = vrot.slane %v1025_v17, %v1083_v43 }
 0x125   : > { %v1086_v61 = vsel %vm1085_vm3, %v1084_v55, %v1079_v28 }
 0x129   : > { %v858_v26 = vpop.xlane.xlu1 %857 }
 0x12a   : > { %v1026_v3 = vsub.f32 %v858_v26, %v2189_v52 }
 0x12c   : > { %v1091_v47 = vrot.slane %v1026_v3, %v1090_v9 }
 0x12e   : > { %v1093_v6 = vsel %vm1092_vm4, %v1091_v47, %v1086_v61 }
 0x130   : > { %v874_v30 = vpop.xlane.xlu0 %873 }
 0x131   : > { %v1027_v33 = vsub.f32 %v874_v30, %v2189_v52  ;;  %v1146_v30 = vsub.s32 %v1143_v19, %v1638_v1 }
 0x133   : > { %v1098_v56 = vrot.slane %v1027_v33, %v1097_v41 }
 0x135   : > { %v1100_v44 = vsel %vm1099_vm5, %v1098_v56, %v1093_v6 }
 0x136   : > { %v890_v24 = vpop.xlane.xlu1 %889 }
 0x137   : > { %v1028_v38 = vsub.f32 %v890_v24, %v2189_v52  ;;  %v1157_v24 = vadd.s32 4294967176, %v2186_v16 }
 0x139   : > { %v1105_v7 = vrot.slane %v1028_v38, %v1104_v2  ;;  %v1160_v17 = vsub.s32 %v1157_v24, %v1638_v1 }
 0x13b   : > { %v1107_v46 = vsel %vm1106_vm6, %v1105_v7, %v1100_v44 }
 0x13d   : > { %v906_v50 = vpop.xlane.xlu0 %905 }
 0x13e   : > { %v1029_v62 = vsub.f32 %v906_v50, %v2189_v52 }
 0x140   : > { %v1112_v14 = vrot.slane %v1029_v62, %v1111_v58 }
 0x142   : > { %v1114_v53 = vsel %vm1113_vm7, %v1112_v14, %v1107_v46 }
 0x146   : > { %v922_v57 = vpop.xlane.xlu1 %921 }
 0x147   : > { %v1030_v29 = vsub.f32 %v922_v57, %v2189_v52 }
 0x149   : > { %v1119_v23 = vrot.slane %v1030_v29, %v1118_v60 }
 0x14b   : > { %v1121_v0 = vsel %vm1120_vm8, %v1119_v23, %v1114_v53 }
 0x14d   : > { %v938_v59 = vpop.xlane.xlu0 %937 }
 0x14e   : > { %v1031_v10 = vsub.f32 %v938_v59, %v2189_v52 }
 0x150   : > { %v1126_v21 = vrot.slane %v1031_v10, %v1125_v51 }
 0x152   : > { %v1128_v34 = vsel %vm1127_vm9, %v1126_v21, %v1121_v0 }
 0x153   : > { %v954_v39 = vpop.xlane.xlu1 %953 }
 0x154   : > { %v1032_v18 = vsub.f32 %v954_v39, %v2189_v52 }
 0x156   : > { %v1133_v49 = vrot.slane %v1032_v18, %v1132_v45 }
 0x158   : > { %v1135_v37 = vsel %vm1134_vm10, %v1133_v49, %v1128_v34 }
 0x15a   : > { %v970_v15 = vpop.xlane.xlu0 %969 }
 0x15b   : > { %v1033_v26 = vsub.f32 %v970_v15, %v2189_v52 }
 0x15d   : > { %v1140_v27 = vrot.slane %v1033_v26, %v1139_v48 }
 0x15f   : > { %v1142_v20 = vsel %vm1141_vm11, %v1140_v27, %v1135_v37 }
 0x163   : > { %v986_v4 = vpop.xlane.xlu1 %985 }
 0x164   : > { %v1034_v25 = vsub.f32 %v986_v4, %v2189_v52 }
 0x166   : > { %v1147_v40 = vrot.slane %v1034_v25, %v1146_v30 }
 0x168   : > { %v1149_v32 = vsel %vm1148_vm12, %v1147_v40, %v1142_v20 }
 0x16a   : > { %v1002_v31 = vpop.xlane.xlu0 %1001 }
 0x16b   : > { %v1035_v36 = vsub.f32 %v1002_v31, %v2189_v52 }
 0x16d   : > { %v1154_v43 = vrot.slane %v1035_v36, %v1153_v35 }
 0x16f   : > { %v1156_v12 = vsel %vm1155_vm13, %v1154_v43, %v1149_v32 }
 0x170   : > { %v1018_v42 = vpop.xlane.xlu1 %1017 }
 0x171   : > { %v1036_v50 = vsub.f32 %v1018_v42, %v2189_v52 }
 0x173   : > { %v1161_v16 = vrot.slane %v1036_v50, %v1160_v17 }
 0x175   : > { %v1163_v1 = vsel %vm1162_vm14, %v1161_v16, %v1156_v12 }
 0x176   : > { %1165 = vst [vmem:[%s202_s5] sm:$0x1] %v1163_v1 }
 0x177   : > { %1400 = shalt.err (!%p1397_p13)
}
 0x178   : > { %s1401_s23 = scalar_lea.hbm %s2245_s13, 16  ;;  %s1405_s9 = scalar_lea.hbm %s2292_s3, 32 }
 0x179   : > { %p1402_p7 = scmp.ne.s32.totalorder %s2245_s13, %s1401_s23  ;;  %p1406_p1 = scmp.lt.u32.totalorder %s2245_s13, %s2292_s3 }
 0x17a   : > { %p1407_p11 = scmp.lt.u32.totalorder %s1405_s9, %s1401_s23  ;;  %p1409_p9 = scmp.lt.u32.totalorder %s1401_s23, %s2245_s13 }
 0x17b   : > { %p1403_p3 = pnand %p1402_p7, %p2311_p10 }
 0x17c   : > { %p1408_p8 = por %p1407_p11, %p1406_p1 }
 0x17d   : > { %p1404_p12 = pneg %p1403_p3 }
 0x17e   : > { %p1410_p2 = por %p1409_p9, %p1408_p8 }
 0x180   : > { %p1411_p4 = pnand %p1410_p2, %p1404_p12 }
 0x182   : > { %1414 = shalt.err (!%p1411_p4)
}
 0x183   : > { %1276 = dma.vmem_to_hbm [thread:$0]  (%p2311_p10), %s2247_s8, 16, %s2245_s13, %s1167_s18  }
 0x184 PF: > { %s1191_s29 = sand.u32 1, %s1445_s14   ;;  %p2312_p5 = scmp.ne.s32.totalorder %s2301_s26, 0 }
 0x185   : > { %p2313_p0 = scmp.ge.s32.totalorder %s1457_s17, 2  ;;  %s1192_s6 = scalar_lea.sflag [#allocation5], %s1191_s29 }
 0x187   : > { %p1287_p6 = pnand %p2313_p0, %p2312_p5 }
 0x189   : > { %1440 = dma.done.wait (!%p1287_p6), %s1192_s6, 16  }
 0x18a   : > { %1442 = vsyncadd (!%p1287_p6), %s1192_s6, 4294967280  ;;  %p18_p13 = scmp.ge.s32.totalorder %s1512_s19, 4   ;;  %s2314_s14 = smov %s1449_s15 }
 0x18b   : > { %s2315_s15 = smov %s1453_s16  ;;  %s2316_s16 = smov %s1524_s22 }
 0x18c   : > { %s2317_s17 = smov %s1512_s19  ;;  %20 = sbr.rel (!%p18_p13) target bundleno = 8 (0x8), region = 81 }
 0x193   :  { %1196 = vsyncpa [#allocation4], 1 }
 0x194   :  { %1198 = vsyncpa [#allocation4 + $0x1], 1 }
 0x195   :  { %1199 = vsyncpa [#allocation7], 1 }
 0x196   :  { %1200 = vsyncpa [#allocation5], 1 }
 0x197   :  { %1202 = vsyncpa [#allocation5 + $0x1], 1 }

</bundles_post_ra>
